<compile_context>
chip_gen: v6e
topology: v6e:2x2x1
jax: 0.10.0
libtpu: 0.0.40
codegen_flags: <defaults>
</compile_context>

<pallas_src>
import functools

import jax
import jax.numpy as jnp
from jax import lax
from jax.experimental import pallas as pl
from jax.experimental.pallas import tpu as pltpu


def _pick_tile(dim, pref, align):
    """Largest tile <= pref that divides `dim` and is a multiple of `align`.
    Falls back to the full dim (always satisfies TPU (8,128) tiling rules)."""
    if dim <= pref:
        return dim
    t = (pref // align) * align
    while t >= align:
        if dim % t == 0:
            return t
        t -= align
    return dim


# ----------------------------------------------------------------------------
# Kernel 1: fused qkv projection.
# One row-tile of x per grid step; the kernel slices the (K, 3C) weight into
# its q/k/v thirds and writes three separate lane-dense (tm, C) outputs, so
# the (B,N,3,H,D) permute of the reference implementation never materializes.
# ----------------------------------------------------------------------------
def _qkv_kernel(C, x_ref, w_ref, b_ref, q_ref, k_ref, v_ref):
    x = x_ref[...]                                         # (tm, K)
    for idx, o_ref in enumerate((q_ref, k_ref, v_ref)):
        w = w_ref[:, idx * C:(idx + 1) * C]                # (K, C) static slice
        b = b_ref[:, idx * C:(idx + 1) * C]                # (1, C)
        acc = jnp.dot(x, w, preferred_element_type=jnp.float32) + b
        o_ref[...] = acc.astype(o_ref.dtype)


def qkv_projection(x2d, w_qkv, b_qkv, C, tm_pref=256):
    M, K = x2d.shape
    assert w_qkv.shape == (K, 3 * C)
    tm = _pick_tile(M, tm_pref, 8)
    out_sd = jax.ShapeDtypeStruct((M, C), x2d.dtype)
    return pl.pallas_call(
        functools.partial(_qkv_kernel, C),
        out_shape=(out_sd, out_sd, out_sd),
        grid=(M // tm,),
        in_specs=[
            pl.BlockSpec((tm, K), lambda i: (i, 0)),
            pl.BlockSpec((K, 3 * C), lambda i: (0, 0)),
            pl.BlockSpec((1, 3 * C), lambda i: (0, 0)),
        ],
        out_specs=(
            pl.BlockSpec((tm, C), lambda i: (i, 0)),
            pl.BlockSpec((tm, C), lambda i: (i, 0)),
            pl.BlockSpec((tm, C), lambda i: (i, 0)),
        ),
        compiler_params=pltpu.CompilerParams(
            dimension_semantics=("parallel",)),
    )(x2d, w_qkv, b_qkv.reshape(1, 3 * C))


# ----------------------------------------------------------------------------
# Kernel 2: tiled dense layer (output projection).
# ----------------------------------------------------------------------------
def _linear_kernel(x_ref, w_ref, b_ref, o_ref):
    acc = jnp.dot(x_ref[...], w_ref[...], preferred_element_type=jnp.float32)
    o_ref[...] = (acc + b_ref[...]).astype(o_ref.dtype)


def linear(x2d, w, b, tm_pref=256, tn_pref=512):
    M, K = x2d.shape
    K2, Nout = w.shape
    assert K == K2
    tm = _pick_tile(M, tm_pref, 8)
    tn = _pick_tile(Nout, tn_pref, 128)
    return pl.pallas_call(
        _linear_kernel,
        out_shape=jax.ShapeDtypeStruct((M, Nout), x2d.dtype),
        grid=(M // tm, Nout // tn),
        in_specs=[
            pl.BlockSpec((tm, K), lambda i, j: (i, 0)),
            pl.BlockSpec((K, tn), lambda i, j: (0, j)),
            pl.BlockSpec((1, tn), lambda i, j: (0, j)),
        ],
        out_specs=pl.BlockSpec((tm, tn), lambda i, j: (i, j)),
        compiler_params=pltpu.CompilerParams(
            dimension_semantics=("parallel", "parallel")),
    )(x2d, w, b.reshape(1, Nout))


# ----------------------------------------------------------------------------
# Kernel 3: multi-head scaled-dot-product attention.
# Grid = (batch, query-tiles); each step handles ALL heads of one query tile.
# Inputs q/k/v are (B, N, H, D) (no transpose needed from the qkv projection).
# Outputs: context in lane-dense (B, N, C) layout and attn (B, H, N, N) in the
# input dtype (matches PyTorch's dtype-preserving softmax).
# ----------------------------------------------------------------------------
def _mhsa_kernel(scale, num_heads, head_dim,
                 q_ref, k_ref, v_ref, ctx_ref, attn_ref):
    # q_ref: (1, tq, H, D); k_ref/v_ref: (1, N, H, D)
    # ctx_ref: (1, tq, C);  attn_ref: (1, H, tq, N)
    H, D = num_heads, head_dim
    for h in range(H):                       # static unroll over heads
        qh = q_ref[0, :, h, :] * scale       # fold scale into q: (tq, D)
        kh = k_ref[0, :, h, :]               # (N, D)
        vh = v_ref[0, :, h, :]               # (N, D)
        # q @ k^T via dot_general contracting D of both (no transpose).
        s = lax.dot_general(qh, kh, (((1,), (1,)), ((), ())),
                            preferred_element_type=jnp.float32)   # (tq, N)
        s = s - jnp.max(s, axis=-1, keepdims=True)                # stable softmax
        e = jnp.exp(s)
        r = pl.reciprocal(jnp.sum(e, axis=-1, keepdims=True), approx=True)
        p = e * r                                                 # (tq, N) f32
        attn_ref[0, h, :, :] = p.astype(attn_ref.dtype)
        ctx = jnp.dot(p.astype(vh.dtype), vh,
                      preferred_element_type=jnp.float32)          # (tq, D)
        ctx_ref[0, :, h * D:(h + 1) * D] = ctx.astype(ctx_ref.dtype)


def multi_head_attention(q, k, v, scale, tq_pref=256):
    # q, k, v: (B, N, H, D)
    B, N, H, D = q.shape
    C = H * D
    tq = _pick_tile(N, tq_pref, 8)  # query tiling keeps scores VMEM-bounded (v7x)
    kernel = functools.partial(_mhsa_kernel, scale, H, D)
    q_spec = pl.BlockSpec((1, tq, H, D), lambda b, qi: (b, qi, 0, 0))
    kv_spec = pl.BlockSpec((1, N, H, D), lambda b, qi: (b, 0, 0, 0))
    ctx, attn = pl.pallas_call(
        kernel,
        out_shape=(
            jax.ShapeDtypeStruct((B, N, C), q.dtype),      # lane-dense context
            jax.ShapeDtypeStruct((B, H, N, N), q.dtype),   # attn in input dtype
        ),
        grid=(B, N // tq),
        in_specs=[q_spec, kv_spec, kv_spec],
        out_specs=(
            pl.BlockSpec((1, tq, C), lambda b, qi: (b, qi, 0)),
            pl.BlockSpec((1, H, tq, N), lambda b, qi: (b, 0, qi, 0)),
        ),
        compiler_params=pltpu.CompilerParams(
            dimension_semantics=("parallel", "parallel")),
    )(q, k, v)
    return ctx, attn


# ----------------------------------------------------------------------------
# Full forward pass, mirroring Attention.forward (returns (x, attn)).
# ----------------------------------------------------------------------------
def attention_forward(x, params, num_heads):
    B, N, C = x.shape
    D = C // num_heads
    scale = D ** (-0.5)  # qk_scale=None -> head_dim ** -0.5

    # Fused qkv projection -> three (B*N, C) tensors (qkv_bias=False -> zero bias).
    q2, k2, v2 = qkv_projection(x.reshape(B * N, C),
                                params["w_qkv"], params["b_qkv"], C)
    # Free reshapes only (no transpose / extra HBM traffic).
    q = q2.reshape(B, N, num_heads, D)
    k = k2.reshape(B, N, num_heads, D)
    v = v2.reshape(B, N, num_heads, D)

    ctx, attn = multi_head_attention(q, k, v, scale)   # (B,N,C), (B,H,N,N)
    # attn_drop is identity (p=0.0)

    out = linear(ctx.reshape(B * N, C), params["w_proj"], params["b_proj"])
    out = out.reshape(B, N, C)
    # proj_drop is identity (p=0.0)
    return out, attn


def init_params(key, dim):
    k1, k2, k3 = jax.random.split(key, 3)
    # Weights stored as (in_features, out_features): kernel computes x @ W + b.
    w_qkv = jax.random.normal(k1, (dim, 3 * dim), jnp.float32) * (dim ** -0.5)
    b_qkv = jnp.zeros((3 * dim,), jnp.float32)  # qkv_bias=False
    w_proj = jax.random.normal(k2, (dim, dim), jnp.float32) * (dim ** -0.5)
    b_proj = jax.random.normal(k3, (dim,), jnp.float32) * 0.02
    return dict(w_qkv=w_qkv, b_qkv=b_qkv, w_proj=w_proj, b_proj=b_proj)


def reference_forward(x, params, num_heads):
    """Pure-JAX reference matching the PyTorch module exactly."""
    B, N, C = x.shape
    D = C // num_heads
    scale = D ** (-0.5)
    qkv = (x.reshape(B * N, C) @ params["w_qkv"] + params["b_qkv"])
    qkv = qkv.reshape(B, N, 3, num_heads, D).transpose(2, 0, 3, 1, 4)
    q, k, v = qkv[0], qkv[1], qkv[2]
    attn = jax.nn.softmax((q @ jnp.swapaxes(k, -2, -1)) * scale, axis=-1)
    ctx = (attn @ v).transpose(0, 2, 1, 3).reshape(B, N, C)
    out = ctx @ params["w_proj"] + params["b_proj"]
    return out, attn


if __name__ == "__main__":
    B, N, C = 2, 8, 32
    num_heads = 8

    key = jax.random.PRNGKey(0)
    kx, kp = jax.random.split(key)
    x = jax.random.normal(kx, (B, N, C), jnp.float32)
    params = init_params(kp, C)

    fwd = jax.jit(attention_forward, static_argnums=2)
    out, attn = fwd(x, params, num_heads)
    jax.block_until_ready((out, attn))

    assert out.shape == (B, N, C)
    assert attn.shape == (B, num_heads, N, N)
    # Softmax rows sum to ~1 (approx reciprocal -> loose tolerance).
    assert jnp.allclose(jnp.sum(attn, axis=-1), 1.0, atol=2e-2)

    out_ref, attn_ref = reference_forward(x, params, num_heads)
    assert jnp.allclose(out, out_ref, rtol=2e-2, atol=2e-2)
    assert jnp.allclose(attn, attn_ref, rtol=2e-2, atol=2e-2)

    print("KERNEL_OK")
</pallas_src>

<mosaic_0001>
module attributes {stable_mosaic.version = 11 : i64} {
  func.func @_linear_kernel(%arg0: i32, %arg1: i32, %arg2: memref<16x32xf32, #tpu.memory_space<vmem>>, %arg3: memref<32x32xf32, #tpu.memory_space<vmem>>, %arg4: memref<1x32xf32, #tpu.memory_space<vmem>>, %arg5: memref<16x32xf32, #tpu.memory_space<vmem>>) attributes {dimension_semantics = [#tpu.dimension_semantics<parallel>, #tpu.dimension_semantics<parallel>], iteration_bounds = array<i64: 1, 1>, scalar_prefetch = 0 : i64, scratch_operands = 0 : i64, tpu.core_type = #tpu.core_type<tc>, window_params = [{transform_indices = @transform_0, window_bounds = array<i64: 16, 32>}, {transform_indices = @transform_1, window_bounds = array<i64: 32, 32>}, {transform_indices = @transform_2, window_bounds = array<i64: 1, 32>}, {transform_indices = @transform_3, window_bounds = array<i64: 16, 32>}]} {
    %c0 = arith.constant 0 : index
    %c0_0 = arith.constant 0 : index
    %0 = vector.load %arg2[%c0, %c0_0] : memref<16x32xf32, #tpu.memory_space<vmem>>, vector<16x32xf32>
    %c0_1 = arith.constant 0 : index
    %c0_2 = arith.constant 0 : index
    %1 = vector.load %arg3[%c0_1, %c0_2] : memref<32x32xf32, #tpu.memory_space<vmem>>, vector<32x32xf32>
    %cst = arith.constant dense<0.000000e+00> : vector<16x32xf32>
    %2 = tpu.matmul %0, %1, %cst {dimension_numbers = #tpu.dot_dimension_numbers<[1], [0], [0], [1], [0, 0, 1, 1], [], []>} : vector<16x32xf32>, vector<32x32xf32>, vector<16x32xf32> -> vector<16x32xf32>
    %c0_3 = arith.constant 0 : index
    %c0_4 = arith.constant 0 : index
    %3 = vector.load %arg4[%c0_3, %c0_4] : memref<1x32xf32, #tpu.memory_space<vmem>>, vector<1x32xf32>
    %4 = vector.broadcast %3 : vector<1x32xf32> to vector<16x32xf32>
    %5 = arith.addf %2, %4 : vector<16x32xf32>
    %c0_5 = arith.constant 0 : index
    %c0_6 = arith.constant 0 : index
    %6 = vector.load %arg5[%c0_5, %c0_6] : memref<16x32xf32, #tpu.memory_space<vmem>>, vector<16x32xf32>
    tpu.vector_store %arg5[%c0_5, %c0_6], %5 {strides = array<i32>} : memref<16x32xf32, #tpu.memory_space<vmem>>, vector<16x32xf32>,
    return
  }
  func.func @transform_0(%arg0: i32, %arg1: i32) -> (i32, i32) {
    %c0_i32 = arith.constant 0 : i32
    %c0_i32_0 = arith.constant 0 : i32
    return %arg0, %c0_i32 : i32, i32
  }
  func.func @transform_1(%arg0: i32, %arg1: i32) -> (i32, i32) {
    %c0_i32 = arith.constant 0 : i32
    %c0_i32_0 = arith.constant 0 : i32
    return %c0_i32, %arg1 : i32, i32
  }
  func.func @transform_2(%arg0: i32, %arg1: i32) -> (i32, i32) {
    %c0_i32 = arith.constant 0 : i32
    %c0_i32_0 = arith.constant 0 : i32
    return %c0_i32, %arg1 : i32, i32
  }
  func.func @transform_3(%arg0: i32, %arg1: i32) -> (i32, i32) {
    %c0_i32 = arith.constant 0 : i32
    return %arg0, %arg1 : i32, i32
  }
}

module attributes {stable_mosaic.version = 11 : i64} {
  func.func @_mhsa_kernel(%arg0: i32, %arg1: i32, %arg2: memref<1x8x8x4xf32, #tpu.memory_space<vmem>>, %arg3: memref<1x8x8x4xf32, #tpu.memory_space<vmem>>, %arg4: memref<1x8x8x4xf32, #tpu.memory_space<vmem>>, %arg5: memref<1x8x32xf32, #tpu.memory_space<vmem>>, %arg6: memref<1x8x8x8xf32, #tpu.memory_space<vmem>>) attributes {dimension_semantics = [#tpu.dimension_semantics<parallel>, #tpu.dimension_semantics<parallel>], iteration_bounds = array<i64: 2, 1>, scalar_prefetch = 0 : i64, scratch_operands = 0 : i64, tpu.core_type = #tpu.core_type<tc>, window_params = [{transform_indices = @transform_0, window_bounds = array<i64: 1, 8, 8, 4>}, {transform_indices = @transform_1, window_bounds = array<i64: 1, 8, 8, 4>}, {transform_indices = @transform_2, window_bounds = array<i64: 1, 8, 8, 4>}, {transform_indices = @transform_3, window_bounds = array<i64: 1, 8, 32>}, {transform_indices = @transform_4, window_bounds = array<i64: 1, 8, 8, 8>}]} {
    %c0 = arith.constant 0 : index
    %c0_0 = arith.constant 0 : index
    %c0_1 = arith.constant 0 : index
    %c0_2 = arith.constant 0 : index
    %0 = vector.load %arg2[%c0, %c0_0, %c0_1, %c0_2] : memref<1x8x8x4xf32, #tpu.memory_space<vmem>>, vector<1x8x1x4xf32>
    %1 = vector.shape_cast %0 : vector<1x8x1x4xf32> to vector<8x4xf32>
    %cst = arith.constant 5.000000e-01 : f32
    %2 = vector.broadcast %cst : f32 to vector<8x4xf32>
    %3 = arith.mulf %1, %2 : vector<8x4xf32>
    %c0_3 = arith.constant 0 : index
    %c0_4 = arith.constant 0 : index
    %c0_5 = arith.constant 0 : index
    %c0_6 = arith.constant 0 : index
    %4 = vector.load %arg3[%c0_3, %c0_4, %c0_5, %c0_6] : memref<1x8x8x4xf32, #tpu.memory_space<vmem>>, vector<1x8x1x4xf32>
    %5 = vector.shape_cast %4 : vector<1x8x1x4xf32> to vector<8x4xf32>
    %c0_7 = arith.constant 0 : index
    %c0_8 = arith.constant 0 : index
    %c0_9 = arith.constant 0 : index
    %c0_10 = arith.constant 0 : index
    %6 = vector.load %arg4[%c0_7, %c0_8, %c0_9, %c0_10] : memref<1x8x8x4xf32, #tpu.memory_space<vmem>>, vector<1x8x1x4xf32>
    %7 = vector.shape_cast %6 : vector<1x8x1x4xf32> to vector<8x4xf32>
    %cst_11 = arith.constant dense<0.000000e+00> : vector<8x8xf32>
    %8 = tpu.matmul %3, %5, %cst_11 {dimension_numbers = #tpu.dot_dimension_numbers<[1], [1], [0], [0], [0, 0, 1, 0], [], []>} : vector<8x4xf32>, vector<8x4xf32>, vector<8x8xf32> -> vector<8x8xf32>
    %cst_12 = arith.constant dense<0xFF800000> : vector<8xf32>
    %9 = vector.multi_reduction <maximumf>, %8, %cst_12 [1] : vector<8x8xf32> to vector<8xf32>
    %10 = vector.shape_cast %9 : vector<8xf32> to vector<8x1xf32>
    %11 = vector.broadcast %10 : vector<8x1xf32> to vector<8x8xf32>
    %12 = arith.subf %8, %11 : vector<8x8xf32>
    %13 = math.exp %12 : vector<8x8xf32>
    %cst_13 = arith.constant dense<0.000000e+00> : vector<8xf32>
    %14 = vector.multi_reduction <add>, %13, %cst_13 [1] : vector<8x8xf32> to vector<8xf32>
    %15 = vector.shape_cast %14 : vector<8xf32> to vector<8x1xf32>
    %16 = tpu.reciprocal %15 {approx = true} : vector<8x1xf32> -> vector<8x1xf32>
    %17 = vector.broadcast %16 : vector<8x1xf32> to vector<8x8xf32>
    %18 = arith.mulf %13, %17 : vector<8x8xf32>
    %c0_14 = arith.constant 0 : index
    %c0_15 = arith.constant 0 : index
    %c0_16 = arith.constant 0 : index
    %c0_17 = arith.constant 0 : index
    %19 = vector.load %arg6[%c0_14, %c0_15, %c0_16, %c0_17] : memref<1x8x8x8xf32, #tpu.memory_space<vmem>>, vector<1x1x8x8xf32>
    %20 = vector.shape_cast %19 : vector<1x1x8x8xf32> to vector<8x8xf32>
    %21 = vector.shape_cast %18 : vector<8x8xf32> to vector<1x1x8x8xf32>
    tpu.vector_store %arg6[%c0_14, %c0_15, %c0_16, %c0_17], %21 {strides = array<i32>} : memref<1x8x8x8xf32, #tpu.memory_space<vmem>>, vector<1x1x8x8xf32>,
    %cst_18 = arith.constant dense<0.000000e+00> : vector<8x4xf32>
    %22 = tpu.matmul %18, %7, %cst_18 {dimension_numbers = #tpu.dot_dimension_numbers<[1], [0], [0], [1], [0, 0, 1, 1], [], []>} : vector<8x8xf32>, vector<8x4xf32>, vector<8x4xf32> -> vector<8x4xf32>
    %c0_19 = arith.constant 0 : index
    %c0_20 = arith.constant 0 : index
    %c0_21 = arith.constant 0 : index
    %23 = vector.load %arg5[%c0_19, %c0_20, %c0_21] : memref<1x8x32xf32, #tpu.memory_space<vmem>>, vector<1x8x4xf32>
    %24 = vector.shape_cast %23 : vector<1x8x4xf32> to vector<8x4xf32>
    %25 = vector.shape_cast %22 : vector<8x4xf32> to vector<1x8x4xf32>
    tpu.vector_store %arg5[%c0_19, %c0_20, %c0_21], %25 {strides = array<i32>} : memref<1x8x32xf32, #tpu.memory_space<vmem>>, vector<1x8x4xf32>,
    %c0_22 = arith.constant 0 : index
    %c0_23 = arith.constant 0 : index
    %c1 = arith.constant 1 : index
    %c0_24 = arith.constant 0 : index
    %26 = vector.load %arg2[%c0_22, %c0_23, %c1, %c0_24] : memref<1x8x8x4xf32, #tpu.memory_space<vmem>>, vector<1x8x1x4xf32>
    %27 = vector.shape_cast %26 : vector<1x8x1x4xf32> to vector<8x4xf32>
    %cst_25 = arith.constant 5.000000e-01 : f32
    %28 = vector.broadcast %cst_25 : f32 to vector<8x4xf32>
    %29 = arith.mulf %27, %28 : vector<8x4xf32>
    %c0_26 = arith.constant 0 : index
    %c0_27 = arith.constant 0 : index
    %c1_28 = arith.constant 1 : index
    %c0_29 = arith.constant 0 : index
    %30 = vector.load %arg3[%c0_26, %c0_27, %c1_28, %c0_29] : memref<1x8x8x4xf32, #tpu.memory_space<vmem>>, vector<1x8x1x4xf32>
    %31 = vector.shape_cast %30 : vector<1x8x1x4xf32> to vector<8x4xf32>
    %c0_30 = arith.constant 0 : index
    %c0_31 = arith.constant 0 : index
    %c1_32 = arith.constant 1 : index
    %c0_33 = arith.constant 0 : index
    %32 = vector.load %arg4[%c0_30, %c0_31, %c1_32, %c0_33] : memref<1x8x8x4xf32, #tpu.memory_space<vmem>>, vector<1x8x1x4xf32>
    %33 = vector.shape_cast %32 : vector<1x8x1x4xf32> to vector<8x4xf32>
    %cst_34 = arith.constant dense<0.000000e+00> : vector<8x8xf32>
    %34 = tpu.matmul %29, %31, %cst_34 {dimension_numbers = #tpu.dot_dimension_numbers<[1], [1], [0], [0], [0, 0, 1, 0], [], []>} : vector<8x4xf32>, vector<8x4xf32>, vector<8x8xf32> -> vector<8x8xf32>
    %cst_35 = arith.constant dense<0xFF800000> : vector<8xf32>
    %35 = vector.multi_reduction <maximumf>, %34, %cst_35 [1] : vector<8x8xf32> to vector<8xf32>
    %36 = vector.shape_cast %35 : vector<8xf32> to vector<8x1xf32>
    %37 = vector.broadcast %36 : vector<8x1xf32> to vector<8x8xf32>
    %38 = arith.subf %34, %37 : vector<8x8xf32>
    %39 = math.exp %38 : vector<8x8xf32>
    %cst_36 = arith.constant dense<0.000000e+00> : vector<8xf32>
    %40 = vector.multi_reduction <add>, %39, %cst_36 [1] : vector<8x8xf32> to vector<8xf32>
    %41 = vector.shape_cast %40 : vector<8xf32> to vector<8x1xf32>
    %42 = tpu.reciprocal %41 {approx = true} : vector<8x1xf32> -> vector<8x1xf32>
    %43 = vector.broadcast %42 : vector<8x1xf32> to vector<8x8xf32>
    %44 = arith.mulf %39, %43 : vector<8x8xf32>
    %c0_37 = arith.constant 0 : index
    %c1_38 = arith.constant 1 : index
    %c0_39 = arith.constant 0 : index
    %c0_40 = arith.constant 0 : index
    %45 = vector.load %arg6[%c0_37, %c1_38, %c0_39, %c0_40] : memref<1x8x8x8xf32, #tpu.memory_space<vmem>>, vector<1x1x8x8xf32>
    %46 = vector.shape_cast %45 : vector<1x1x8x8xf32> to vector<8x8xf32>
    %47 = vector.shape_cast %44 : vector<8x8xf32> to vector<1x1x8x8xf32>
    tpu.vector_store %arg6[%c0_37, %c1_38, %c0_39, %c0_40], %47 {strides = array<i32>} : memref<1x8x8x8xf32, #tpu.memory_space<vmem>>, vector<1x1x8x8xf32>,
    %cst_41 = arith.constant dense<0.000000e+00> : vector<8x4xf32>
    %48 = tpu.matmul %44, %33, %cst_41 {dimension_numbers = #tpu.dot_dimension_numbers<[1], [0], [0], [1], [0, 0, 1, 1], [], []>} : vector<8x8xf32>, vector<8x4xf32>, vector<8x4xf32> -> vector<8x4xf32>
    %c0_42 = arith.constant 0 : index
    %c0_43 = arith.constant 0 : index
    %c4 = arith.constant 4 : index
    %49 = vector.load %arg5[%c0_42, %c0_43, %c4] : memref<1x8x32xf32, #tpu.memory_space<vmem>>, vector<1x8x4xf32>
    %50 = vector.shape_cast %49 : vector<1x8x4xf32> to vector<8x4xf32>
    %51 = vector.shape_cast %48 : vector<8x4xf32> to vector<1x8x4xf32>
    tpu.vector_store %arg5[%c0_42, %c0_43, %c4], %51 {strides = array<i32>} : memref<1x8x32xf32, #tpu.memory_space<vmem>>, vector<1x8x4xf32>,
    %c0_44 = arith.constant 0 : index
    %c0_45 = arith.constant 0 : index
    %c2 = arith.constant 2 : index
    %c0_46 = arith.constant 0 : index
    %52 = vector.load %arg2[%c0_44, %c0_45, %c2, %c0_46] : memref<1x8x8x4xf32, #tpu.memory_space<vmem>>, vector<1x8x1x4xf32>
    %53 = vector.shape_cast %52 : vector<1x8x1x4xf32> to vector<8x4xf32>
    %cst_47 = arith.constant 5.000000e-01 : f32
    %54 = vector.broadcast %cst_47 : f32 to vector<8x4xf32>
    %55 = arith.mulf %53, %54 : vector<8x4xf32>
    %c0_48 = arith.constant 0 : index
    %c0_49 = arith.constant 0 : index
    %c2_50 = arith.constant 2 : index
    %c0_51 = arith.constant 0 : index
    %56 = vector.load %arg3[%c0_48, %c0_49, %c2_50, %c0_51] : memref<1x8x8x4xf32, #tpu.memory_space<vmem>>, vector<1x8x1x4xf32>
    %57 = vector.shape_cast %56 : vector<1x8x1x4xf32> to vector<8x4xf32>
    %c0_52 = arith.constant 0 : index
    %c0_53 = arith.constant 0 : index
    %c2_54 = arith.constant 2 : index
    %c0_55 = arith.constant 0 : index
    %58 = vector.load %arg4[%c0_52, %c0_53, %c2_54, %c0_55] : memref<1x8x8x4xf32, #tpu.memory_space<vmem>>, vector<1x8x1x4xf32>
    %59 = vector.shape_cast %58 : vector<1x8x1x4xf32> to vector<8x4xf32>
    %cst_56 = arith.constant dense<0.000000e+00> : vector<8x8xf32>
    %60 = tpu.matmul %55, %57, %cst_56 {dimension_numbers = #tpu.dot_dimension_numbers<[1], [1], [0], [0], [0, 0, 1, 0], [], []>} : vector<8x4xf32>, vector<8x4xf32>, vector<8x8xf32> -> vector<8x8xf32>
    %cst_57 = arith.constant dense<0xFF800000> : vector<8xf32>
    %61 = vector.multi_reduction <maximumf>, %60, %cst_57 [1] : vector<8x8xf32> to vector<8xf32>
    %62 = vector.shape_cast %61 : vector<8xf32> to vector<8x1xf32>
    %63 = vector.broadcast %62 : vector<8x1xf32> to vector<8x8xf32>
    %64 = arith.subf %60, %63 : vector<8x8xf32>
    %65 = math.exp %64 : vector<8x8xf32>
    %cst_58 = arith.constant dense<0.000000e+00> : vector<8xf32>
    %66 = vector.multi_reduction <add>, %65, %cst_58 [1] : vector<8x8xf32> to vector<8xf32>
    %67 = vector.shape_cast %66 : vector<8xf32> to vector<8x1xf32>
    %68 = tpu.reciprocal %67 {approx = true} : vector<8x1xf32> -> vector<8x1xf32>
    %69 = vector.broadcast %68 : vector<8x1xf32> to vector<8x8xf32>
    %70 = arith.mulf %65, %69 : vector<8x8xf32>
    %c0_59 = arith.constant 0 : index
    %c2_60 = arith.constant 2 : index
    %c0_61 = arith.constant 0 : index
    %c0_62 = arith.constant 0 : index
    %71 = vector.load %arg6[%c0_59, %c2_60, %c0_61, %c0_62] : memref<1x8x8x8xf32, #tpu.memory_space<vmem>>, vector<1x1x8x8xf32>
    %72 = vector.shape_cast %71 : vector<1x1x8x8xf32> to vector<8x8xf32>
    %73 = vector.shape_cast %70 : vector<8x8xf32> to vector<1x1x8x8xf32>
    tpu.vector_store %arg6[%c0_59, %c2_60, %c0_61, %c0_62], %73 {strides = array<i32>} : memref<1x8x8x8xf32, #tpu.memory_space<vmem>>, vector<1x1x8x8xf32>,
    %cst_63 = arith.constant dense<0.000000e+00> : vector<8x4xf32>
    %74 = tpu.matmul %70, %59, %cst_63 {dimension_numbers = #tpu.dot_dimension_numbers<[1], [0], [0], [1], [0, 0, 1, 1], [], []>} : vector<8x8xf32>, vector<8x4xf32>, vector<8x4xf32> -> vector<8x4xf32>
    %c0_64 = arith.constant 0 : index
    %c0_65 = arith.constant 0 : index
    %c8 = arith.constant 8 : index
    %75 = vector.load %arg5[%c0_64, %c0_65, %c8] : memref<1x8x32xf32, #tpu.memory_space<vmem>>, vector<1x8x4xf32>
    %76 = vector.shape_cast %75 : vector<1x8x4xf32> to vector<8x4xf32>
    %77 = vector.shape_cast %74 : vector<8x4xf32> to vector<1x8x4xf32>
    tpu.vector_store %arg5[%c0_64, %c0_65, %c8], %77 {strides = array<i32>} : memref<1x8x32xf32, #tpu.memory_space<vmem>>, vector<1x8x4xf32>,
    %c0_66 = arith.constant 0 : index
    %c0_67 = arith.constant 0 : index
    %c3 = arith.constant 3 : index
    %c0_68 = arith.constant 0 : index
    %78 = vector.load %arg2[%c0_66, %c0_67, %c3, %c0_68] : memref<1x8x8x4xf32, #tpu.memory_space<vmem>>, vector<1x8x1x4xf32>
    %79 = vector.shape_cast %78 : vector<1x8x1x4xf32> to vector<8x4xf32>
    %cst_69 = arith.constant 5.000000e-01 : f32
    %80 = vector.broadcast %cst_69 : f32 to vector<8x4xf32>
    %81 = arith.mulf %79, %80 : vector<8x4xf32>
    %c0_70 = arith.constant 0 : index
    %c0_71 = arith.constant 0 : index
    %c3_72 = arith.constant 3 : index
    %c0_73 = arith.constant 0 : index
    %82 = vector.load %arg3[%c0_70, %c0_71, %c3_72, %c0_73] : memref<1x8x8x4xf32, #tpu.memory_space<vmem>>, vector<1x8x1x4xf32>
    %83 = vector.shape_cast %82 : vector<1x8x1x4xf32> to vector<8x4xf32>
    %c0_74 = arith.constant 0 : index
    %c0_75 = arith.constant 0 : index
    %c3_76 = arith.constant 3 : index
    %c0_77 = arith.constant 0 : index
    %84 = vector.load %arg4[%c0_74, %c0_75, %c3_76, %c0_77] : memref<1x8x8x4xf32, #tpu.memory_space<vmem>>, vector<1x8x1x4xf32>
    %85 = vector.shape_cast %84 : vector<1x8x1x4xf32> to vector<8x4xf32>
    %cst_78 = arith.constant dense<0.000000e+00> : vector<8x8xf32>
    %86 = tpu.matmul %81, %83, %cst_78 {dimension_numbers = #tpu.dot_dimension_numbers<[1], [1], [0], [0], [0, 0, 1, 0], [], []>} : vector<8x4xf32>, vector<8x4xf32>, vector<8x8xf32> -> vector<8x8xf32>
    %cst_79 = arith.constant dense<0xFF800000> : vector<8xf32>
    %87 = vector.multi_reduction <maximumf>, %86, %cst_79 [1] : vector<8x8xf32> to vector<8xf32>
    %88 = vector.shape_cast %87 : vector<8xf32> to vector<8x1xf32>
    %89 = vector.broadcast %88 : vector<8x1xf32> to vector<8x8xf32>
    %90 = arith.subf %86, %89 : vector<8x8xf32>
    %91 = math.exp %90 : vector<8x8xf32>
    %cst_80 = arith.constant dense<0.000000e+00> : vector<8xf32>
    %92 = vector.multi_reduction <add>, %91, %cst_80 [1] : vector<8x8xf32> to vector<8xf32>
    %93 = vector.shape_cast %92 : vector<8xf32> to vector<8x1xf32>
    %94 = tpu.reciprocal %93 {approx = true} : vector<8x1xf32> -> vector<8x1xf32>
    %95 = vector.broadcast %94 : vector<8x1xf32> to vector<8x8xf32>
    %96 = arith.mulf %91, %95 : vector<8x8xf32>
    %c0_81 = arith.constant 0 : index
    %c3_82 = arith.constant 3 : index
    %c0_83 = arith.constant 0 : index
    %c0_84 = arith.constant 0 : index
    %97 = vector.load %arg6[%c0_81, %c3_82, %c0_83, %c0_84] : memref<1x8x8x8xf32, #tpu.memory_space<vmem>>, vector<1x1x8x8xf32>
    %98 = vector.shape_cast %97 : vector<1x1x8x8xf32> to vector<8x8xf32>
    %99 = vector.shape_cast %96 : vector<8x8xf32> to vector<1x1x8x8xf32>
    tpu.vector_store %arg6[%c0_81, %c3_82, %c0_83, %c0_84], %99 {strides = array<i32>} : memref<1x8x8x8xf32, #tpu.memory_space<vmem>>, vector<1x1x8x8xf32>,
    %cst_85 = arith.constant dense<0.000000e+00> : vector<8x4xf32>
    %100 = tpu.matmul %96, %85, %cst_85 {dimension_numbers = #tpu.dot_dimension_numbers<[1], [0], [0], [1], [0, 0, 1, 1], [], []>} : vector<8x8xf32>, vector<8x4xf32>, vector<8x4xf32> -> vector<8x4xf32>
    %c0_86 = arith.constant 0 : index
    %c0_87 = arith.constant 0 : index
    %c12 = arith.constant 12 : index
    %101 = vector.load %arg5[%c0_86, %c0_87, %c12] : memref<1x8x32xf32, #tpu.memory_space<vmem>>, vector<1x8x4xf32>
    %102 = vector.shape_cast %101 : vector<1x8x4xf32> to vector<8x4xf32>
    %103 = vector.shape_cast %100 : vector<8x4xf32> to vector<1x8x4xf32>
    tpu.vector_store %arg5[%c0_86, %c0_87, %c12], %103 {strides = array<i32>} : memref<1x8x32xf32, #tpu.memory_space<vmem>>, vector<1x8x4xf32>,
    %c0_88 = arith.constant 0 : index
    %c0_89 = arith.constant 0 : index
    %c4_90 = arith.constant 4 : index
    %c0_91 = arith.constant 0 : index
    %104 = vector.load %arg2[%c0_88, %c0_89, %c4_90, %c0_91] : memref<1x8x8x4xf32, #tpu.memory_space<vmem>>, vector<1x8x1x4xf32>
    %105 = vector.shape_cast %104 : vector<1x8x1x4xf32> to vector<8x4xf32>
    %cst_92 = arith.constant 5.000000e-01 : f32
    %106 = vector.broadcast %cst_92 : f32 to vector<8x4xf32>
    %107 = arith.mulf %105, %106 : vector<8x4xf32>
    %c0_93 = arith.constant 0 : index
    %c0_94 = arith.constant 0 : index
    %c4_95 = arith.constant 4 : index
    %c0_96 = arith.constant 0 : index
    %108 = vector.load %arg3[%c0_93, %c0_94, %c4_95, %c0_96] : memref<1x8x8x4xf32, #tpu.memory_space<vmem>>, vector<1x8x1x4xf32>
    %109 = vector.shape_cast %108 : vector<1x8x1x4xf32> to vector<8x4xf32>
    %c0_97 = arith.constant 0 : index
    %c0_98 = arith.constant 0 : index
    %c4_99 = arith.constant 4 : index
    %c0_100 = arith.constant 0 : index
    %110 = vector.load %arg4[%c0_97, %c0_98, %c4_99, %c0_100] : memref<1x8x8x4xf32, #tpu.memory_space<vmem>>, vector<1x8x1x4xf32>
    %111 = vector.shape_cast %110 : vector<1x8x1x4xf32> to vector<8x4xf32>
    %cst_101 = arith.constant dense<0.000000e+00> : vector<8x8xf32>
    %112 = tpu.matmul %107, %109, %cst_101 {dimension_numbers = #tpu.dot_dimension_numbers<[1], [1], [0], [0], [0, 0, 1, 0], [], []>} : vector<8x4xf32>, vector<8x4xf32>, vector<8x8xf32> -> vector<8x8xf32>
    %cst_102 = arith.constant dense<0xFF800000> : vector<8xf32>
    %113 = vector.multi_reduction <maximumf>, %112, %cst_102 [1] : vector<8x8xf32> to vector<8xf32>
    %114 = vector.shape_cast %113 : vector<8xf32> to vector<8x1xf32>
    %115 = vector.broadcast %114 : vector<8x1xf32> to vector<8x8xf32>
    %116 = arith.subf %112, %115 : vector<8x8xf32>
    %117 = math.exp %116 : vector<8x8xf32>
    %cst_103 = arith.constant dense<0.000000e+00> : vector<8xf32>
    %118 = vector.multi_reduction <add>, %117, %cst_103 [1] : vector<8x8xf32> to vector<8xf32>
    %119 = vector.shape_cast %118 : vector<8xf32> to vector<8x1xf32>
    %120 = tpu.reciprocal %119 {approx = true} : vector<8x1xf32> -> vector<8x1xf32>
    %121 = vector.broadcast %120 : vector<8x1xf32> to vector<8x8xf32>
    %122 = arith.mulf %117, %121 : vector<8x8xf32>
    %c0_104 = arith.constant 0 : index
    %c4_105 = arith.constant 4 : index
    %c0_106 = arith.constant 0 : index
    %c0_107 = arith.constant 0 : index
    %123 = vector.load %arg6[%c0_104, %c4_105, %c0_106, %c0_107] : memref<1x8x8x8xf32, #tpu.memory_space<vmem>>, vector<1x1x8x8xf32>
    %124 = vector.shape_cast %123 : vector<1x1x8x8xf32> to vector<8x8xf32>
    %125 = vector.shape_cast %122 : vector<8x8xf32> to vector<1x1x8x8xf32>
    tpu.vector_store %arg6[%c0_104, %c4_105, %c0_106, %c0_107], %125 {strides = array<i32>} : memref<1x8x8x8xf32, #tpu.memory_space<vmem>>, vector<1x1x8x8xf32>,
    %cst_108 = arith.constant dense<0.000000e+00> : vector<8x4xf32>
    %126 = tpu.matmul %122, %111, %cst_108 {dimension_numbers = #tpu.dot_dimension_numbers<[1], [0], [0], [1], [0, 0, 1, 1], [], []>} : vector<8x8xf32>, vector<8x4xf32>, vector<8x4xf32> -> vector<8x4xf32>
    %c0_109 = arith.constant 0 : index
    %c0_110 = arith.constant 0 : index
    %c16 = arith.constant 16 : index
    %127 = vector.load %arg5[%c0_109, %c0_110, %c16] : memref<1x8x32xf32, #tpu.memory_space<vmem>>, vector<1x8x4xf32>
    %128 = vector.shape_cast %127 : vector<1x8x4xf32> to vector<8x4xf32>
    %129 = vector.shape_cast %126 : vector<8x4xf32> to vector<1x8x4xf32>
    tpu.vector_store %arg5[%c0_109, %c0_110, %c16], %129 {strides = array<i32>} : memref<1x8x32xf32, #tpu.memory_space<vmem>>, vector<1x8x4xf32>,
    %c0_111 = arith.constant 0 : index
    %c0_112 = arith.constant 0 : index
    %c5 = arith.constant 5 : index
    %c0_113 = arith.constant 0 : index
    %130 = vector.load %arg2[%c0_111, %c0_112, %c5, %c0_113] : memref<1x8x8x4xf32, #tpu.memory_space<vmem>>, vector<1x8x1x4xf32>
    %131 = vector.shape_cast %130 : vector<1x8x1x4xf32> to vector<8x4xf32>
    %cst_114 = arith.constant 5.000000e-01 : f32
    %132 = vector.broadcast %cst_114 : f32 to vector<8x4xf32>
    %133 = arith.mulf %131, %132 : vector<8x4xf32>
    %c0_115 = arith.constant 0 : index
    %c0_116 = arith.constant 0 : index
    %c5_117 = arith.constant 5 : index
    %c0_118 = arith.constant 0 : index
    %134 = vector.load %arg3[%c0_115, %c0_116, %c5_117, %c0_118] : memref<1x8x8x4xf32, #tpu.memory_space<vmem>>, vector<1x8x1x4xf32>
    %135 = vector.shape_cast %134 : vector<1x8x1x4xf32> to vector<8x4xf32>
    %c0_119 = arith.constant 0 : index
    %c0_120 = arith.constant 0 : index
    %c5_121 = arith.constant 5 : index
    %c0_122 = arith.constant 0 : index
    %136 = vector.load %arg4[%c0_119, %c0_120, %c5_121, %c0_122] : memref<1x8x8x4xf32, #tpu.memory_space<vmem>>, vector<1x8x1x4xf32>
    %137 = vector.shape_cast %136 : vector<1x8x1x4xf32> to vector<8x4xf32>
    %cst_123 = arith.constant dense<0.000000e+00> : vector<8x8xf32>
    %138 = tpu.matmul %133, %135, %cst_123 {dimension_numbers = #tpu.dot_dimension_numbers<[1], [1], [0], [0], [0, 0, 1, 0], [], []>} : vector<8x4xf32>, vector<8x4xf32>, vector<8x8xf32> -> vector<8x8xf32>
    %cst_124 = arith.constant dense<0xFF800000> : vector<8xf32>
    %139 = vector.multi_reduction <maximumf>, %138, %cst_124 [1] : vector<8x8xf32> to vector<8xf32>
    %140 = vector.shape_cast %139 : vector<8xf32> to vector<8x1xf32>
    %141 = vector.broadcast %140 : vector<8x1xf32> to vector<8x8xf32>
    %142 = arith.subf %138, %141 : vector<8x8xf32>
    %143 = math.exp %142 : vector<8x8xf32>
    %cst_125 = arith.constant dense<0.000000e+00> : vector<8xf32>
    %144 = vector.multi_reduction <add>, %143, %cst_125 [1] : vector<8x8xf32> to vector<8xf32>
    %145 = vector.shape_cast %144 : vector<8xf32> to vector<8x1xf32>
    %146 = tpu.reciprocal %145 {approx = true} : vector<8x1xf32> -> vector<8x1xf32>
    %147 = vector.broadcast %146 : vector<8x1xf32> to vector<8x8xf32>
    %148 = arith.mulf %143, %147 : vector<8x8xf32>
    %c0_126 = arith.constant 0 : index
    %c5_127 = arith.constant 5 : index
    %c0_128 = arith.constant 0 : index
    %c0_129 = arith.constant 0 : index
    %149 = vector.load %arg6[%c0_126, %c5_127, %c0_128, %c0_129] : memref<1x8x8x8xf32, #tpu.memory_space<vmem>>, vector<1x1x8x8xf32>
    %150 = vector.shape_cast %149 : vector<1x1x8x8xf32> to vector<8x8xf32>
    %151 = vector.shape_cast %148 : vector<8x8xf32> to vector<1x1x8x8xf32>
    tpu.vector_store %arg6[%c0_126, %c5_127, %c0_128, %c0_129], %151 {strides = array<i32>} : memref<1x8x8x8xf32, #tpu.memory_space<vmem>>, vector<1x1x8x8xf32>,
    %cst_130 = arith.constant dense<0.000000e+00> : vector<8x4xf32>
    %152 = tpu.matmul %148, %137, %cst_130 {dimension_numbers = #tpu.dot_dimension_numbers<[1], [0], [0], [1], [0, 0, 1, 1], [], []>} : vector<8x8xf32>, vector<8x4xf32>, vector<8x4xf32> -> vector<8x4xf32>
    %c0_131 = arith.constant 0 : index
    %c0_132 = arith.constant 0 : index
    %c20 = arith.constant 20 : index
    %153 = vector.load %arg5[%c0_131, %c0_132, %c20] : memref<1x8x32xf32, #tpu.memory_space<vmem>>, vector<1x8x4xf32>
    %154 = vector.shape_cast %153 : vector<1x8x4xf32> to vector<8x4xf32>
    %155 = vector.shape_cast %152 : vector<8x4xf32> to vector<1x8x4xf32>
    tpu.vector_store %arg5[%c0_131, %c0_132, %c20], %155 {strides = array<i32>} : memref<1x8x32xf32, #tpu.memory_space<vmem>>, vector<1x8x4xf32>,
    %c0_133 = arith.constant 0 : index
    %c0_134 = arith.constant 0 : index
    %c6 = arith.constant 6 : index
    %c0_135 = arith.constant 0 : index
    %156 = vector.load %arg2[%c0_133, %c0_134, %c6, %c0_135] : memref<1x8x8x4xf32, #tpu.memory_space<vmem>>, vector<1x8x1x4xf32>
    %157 = vector.shape_cast %156 : vector<1x8x1x4xf32> to vector<8x4xf32>
    %cst_136 = arith.constant 5.000000e-01 : f32
    %158 = vector.broadcast %cst_136 : f32 to vector<8x4xf32>
    %159 = arith.mulf %157, %158 : vector<8x4xf32>
    %c0_137 = arith.constant 0 : index
    %c0_138 = arith.constant 0 : index
    %c6_139 = arith.constant 6 : index
    %c0_140 = arith.constant 0 : index
    %160 = vector.load %arg3[%c0_137, %c0_138, %c6_139, %c0_140] : memref<1x8x8x4xf32, #tpu.memory_space<vmem>>, vector<1x8x1x4xf32>
    %161 = vector.shape_cast %160 : vector<1x8x1x4xf32> to vector<8x4xf32>
    %c0_141 = arith.constant 0 : index
    %c0_142 = arith.constant 0 : index
    %c6_143 = arith.constant 6 : index
    %c0_144 = arith.constant 0 : index
    %162 = vector.load %arg4[%c0_141, %c0_142, %c6_143, %c0_144] : memref<1x8x8x4xf32, #tpu.memory_space<vmem>>, vector<1x8x1x4xf32>
    %163 = vector.shape_cast %162 : vector<1x8x1x4xf32> to vector<8x4xf32>
    %cst_145 = arith.constant dense<0.000000e+00> : vector<8x8xf32>
    %164 = tpu.matmul %159, %161, %cst_145 {dimension_numbers = #tpu.dot_dimension_numbers<[1], [1], [0], [0], [0, 0, 1, 0], [], []>} : vector<8x4xf32>, vector<8x4xf32>, vector<8x8xf32> -> vector<8x8xf32>
    %cst_146 = arith.constant dense<0xFF800000> : vector<8xf32>
    %165 = vector.multi_reduction <maximumf>, %164, %cst_146 [1] : vector<8x8xf32> to vector<8xf32>
    %166 = vector.shape_cast %165 : vector<8xf32> to vector<8x1xf32>
    %167 = vector.broadcast %166 : vector<8x1xf32> to vector<8x8xf32>
    %168 = arith.subf %164, %167 : vector<8x8xf32>
    %169 = math.exp %168 : vector<8x8xf32>
    %cst_147 = arith.constant dense<0.000000e+00> : vector<8xf32>
    %170 = vector.multi_reduction <add>, %169, %cst_147 [1] : vector<8x8xf32> to vector<8xf32>
    %171 = vector.shape_cast %170 : vector<8xf32> to vector<8x1xf32>
    %172 = tpu.reciprocal %171 {approx = true} : vector<8x1xf32> -> vector<8x1xf32>
    %173 = vector.broadcast %172 : vector<8x1xf32> to vector<8x8xf32>
    %174 = arith.mulf %169, %173 : vector<8x8xf32>
    %c0_148 = arith.constant 0 : index
    %c6_149 = arith.constant 6 : index
    %c0_150 = arith.constant 0 : index
    %c0_151 = arith.constant 0 : index
    %175 = vector.load %arg6[%c0_148, %c6_149, %c0_150, %c0_151] : memref<1x8x8x8xf32, #tpu.memory_space<vmem>>, vector<1x1x8x8xf32>
    %176 = vector.shape_cast %175 : vector<1x1x8x8xf32> to vector<8x8xf32>
    %177 = vector.shape_cast %174 : vector<8x8xf32> to vector<1x1x8x8xf32>
    tpu.vector_store %arg6[%c0_148, %c6_149, %c0_150, %c0_151], %177 {strides = array<i32>} : memref<1x8x8x8xf32, #tpu.memory_space<vmem>>, vector<1x1x8x8xf32>,
    %cst_152 = arith.constant dense<0.000000e+00> : vector<8x4xf32>
    %178 = tpu.matmul %174, %163, %cst_152 {dimension_numbers = #tpu.dot_dimension_numbers<[1], [0], [0], [1], [0, 0, 1, 1], [], []>} : vector<8x8xf32>, vector<8x4xf32>, vector<8x4xf32> -> vector<8x4xf32>
    %c0_153 = arith.constant 0 : index
    %c0_154 = arith.constant 0 : index
    %c24 = arith.constant 24 : index
    %179 = vector.load %arg5[%c0_153, %c0_154, %c24] : memref<1x8x32xf32, #tpu.memory_space<vmem>>, vector<1x8x4xf32>
    %180 = vector.shape_cast %179 : vector<1x8x4xf32> to vector<8x4xf32>
    %181 = vector.shape_cast %178 : vector<8x4xf32> to vector<1x8x4xf32>
    tpu.vector_store %arg5[%c0_153, %c0_154, %c24], %181 {strides = array<i32>} : memref<1x8x32xf32, #tpu.memory_space<vmem>>, vector<1x8x4xf32>,
    %c0_155 = arith.constant 0 : index
    %c0_156 = arith.constant 0 : index
    %c7 = arith.constant 7 : index
    %c0_157 = arith.constant 0 : index
    %182 = vector.load %arg2[%c0_155, %c0_156, %c7, %c0_157] : memref<1x8x8x4xf32, #tpu.memory_space<vmem>>, vector<1x8x1x4xf32>
    %183 = vector.shape_cast %182 : vector<1x8x1x4xf32> to vector<8x4xf32>
    %cst_158 = arith.constant 5.000000e-01 : f32
    %184 = vector.broadcast %cst_158 : f32 to vector<8x4xf32>
    %185 = arith.mulf %183, %184 : vector<8x4xf32>
    %c0_159 = arith.constant 0 : index
    %c0_160 = arith.constant 0 : index
    %c7_161 = arith.constant 7 : index
    %c0_162 = arith.constant 0 : index
    %186 = vector.load %arg3[%c0_159, %c0_160, %c7_161, %c0_162] : memref<1x8x8x4xf32, #tpu.memory_space<vmem>>, vector<1x8x1x4xf32>
    %187 = vector.shape_cast %186 : vector<1x8x1x4xf32> to vector<8x4xf32>
    %c0_163 = arith.constant 0 : index
    %c0_164 = arith.constant 0 : index
    %c7_165 = arith.constant 7 : index
    %c0_166 = arith.constant 0 : index
    %188 = vector.load %arg4[%c0_163, %c0_164, %c7_165, %c0_166] : memref<1x8x8x4xf32, #tpu.memory_space<vmem>>, vector<1x8x1x4xf32>
    %189 = vector.shape_cast %188 : vector<1x8x1x4xf32> to vector<8x4xf32>
    %cst_167 = arith.constant dense<0.000000e+00> : vector<8x8xf32>
    %190 = tpu.matmul %185, %187, %cst_167 {dimension_numbers = #tpu.dot_dimension_numbers<[1], [1], [0], [0], [0, 0, 1, 0], [], []>} : vector<8x4xf32>, vector<8x4xf32>, vector<8x8xf32> -> vector<8x8xf32>
    %cst_168 = arith.constant dense<0xFF800000> : vector<8xf32>
    %191 = vector.multi_reduction <maximumf>, %190, %cst_168 [1] : vector<8x8xf32> to vector<8xf32>
    %192 = vector.shape_cast %191 : vector<8xf32> to vector<8x1xf32>
    %193 = vector.broadcast %192 : vector<8x1xf32> to vector<8x8xf32>
    %194 = arith.subf %190, %193 : vector<8x8xf32>
    %195 = math.exp %194 : vector<8x8xf32>
    %cst_169 = arith.constant dense<0.000000e+00> : vector<8xf32>
    %196 = vector.multi_reduction <add>, %195, %cst_169 [1] : vector<8x8xf32> to vector<8xf32>
    %197 = vector.shape_cast %196 : vector<8xf32> to vector<8x1xf32>
    %198 = tpu.reciprocal %197 {approx = true} : vector<8x1xf32> -> vector<8x1xf32>
    %199 = vector.broadcast %198 : vector<8x1xf32> to vector<8x8xf32>
    %200 = arith.mulf %195, %199 : vector<8x8xf32>
    %c0_170 = arith.constant 0 : index
    %c7_171 = arith.constant 7 : index
    %c0_172 = arith.constant 0 : index
    %c0_173 = arith.constant 0 : index
    %201 = vector.load %arg6[%c0_170, %c7_171, %c0_172, %c0_173] : memref<1x8x8x8xf32, #tpu.memory_space<vmem>>, vector<1x1x8x8xf32>
    %202 = vector.shape_cast %201 : vector<1x1x8x8xf32> to vector<8x8xf32>
    %203 = vector.shape_cast %200 : vector<8x8xf32> to vector<1x1x8x8xf32>
    tpu.vector_store %arg6[%c0_170, %c7_171, %c0_172, %c0_173], %203 {strides = array<i32>} : memref<1x8x8x8xf32, #tpu.memory_space<vmem>>, vector<1x1x8x8xf32>,
    %cst_174 = arith.constant dense<0.000000e+00> : vector<8x4xf32>
    %204 = tpu.matmul %200, %189, %cst_174 {dimension_numbers = #tpu.dot_dimension_numbers<[1], [0], [0], [1], [0, 0, 1, 1], [], []>} : vector<8x8xf32>, vector<8x4xf32>, vector<8x4xf32> -> vector<8x4xf32>
    %c0_175 = arith.constant 0 : index
    %c0_176 = arith.constant 0 : index
    %c28 = arith.constant 28 : index
    %205 = vector.load %arg5[%c0_175, %c0_176, %c28] : memref<1x8x32xf32, #tpu.memory_space<vmem>>, vector<1x8x4xf32>
    %206 = vector.shape_cast %205 : vector<1x8x4xf32> to vector<8x4xf32>
    %207 = vector.shape_cast %204 : vector<8x4xf32> to vector<1x8x4xf32>
    tpu.vector_store %arg5[%c0_175, %c0_176, %c28], %207 {strides = array<i32>} : memref<1x8x32xf32, #tpu.memory_space<vmem>>, vector<1x8x4xf32>,
    return
  }
  func.func @transform_0(%arg0: i32, %arg1: i32) -> (i32, i32, i32, i32) {
    %c0_i32 = arith.constant 0 : i32
    %c0_i32_0 = arith.constant 0 : i32
    %c0_i32_1 = arith.constant 0 : i32
    return %arg0, %arg1, %c0_i32, %c0_i32_0 : i32, i32, i32, i32
  }
  func.func @transform_1(%arg0: i32, %arg1: i32) -> (i32, i32, i32, i32) {
    %c0_i32 = arith.constant 0 : i32
    %c0_i32_0 = arith.constant 0 : i32
    %c0_i32_1 = arith.constant 0 : i32
    %c0_i32_2 = arith.constant 0 : i32
    return %arg0, %c0_i32, %c0_i32_0, %c0_i32_1 : i32, i32, i32, i32
  }
  func.func @transform_2(%arg0: i32, %arg1: i32) -> (i32, i32, i32, i32) {
    %c0_i32 = arith.constant 0 : i32
    %c0_i32_0 = arith.constant 0 : i32
    %c0_i32_1 = arith.constant 0 : i32
    %c0_i32_2 = arith.constant 0 : i32
    return %arg0, %c0_i32, %c0_i32_0, %c0_i32_1 : i32, i32, i32, i32
  }
  func.func @transform_3(%arg0: i32, %arg1: i32) -> (i32, i32, i32) {
    %c0_i32 = arith.constant 0 : i32
    %c0_i32_0 = arith.constant 0 : i32
    return %arg0, %arg1, %c0_i32 : i32, i32, i32
  }
  func.func @transform_4(%arg0: i32, %arg1: i32) -> (i32, i32, i32, i32) {
    %c0_i32 = arith.constant 0 : i32
    %c0_i32_0 = arith.constant 0 : i32
    %c0_i32_1 = arith.constant 0 : i32
    return %arg0, %c0_i32, %arg1, %c0_i32_0 : i32, i32, i32, i32
  }
}

module attributes {stable_mosaic.version = 11 : i64} {
  func.func @_qkv_kernel(%arg0: i32, %arg1: memref<16x32xf32, #tpu.memory_space<vmem>>, %arg2: memref<32x96xf32, #tpu.memory_space<vmem>>, %arg3: memref<1x96xf32, #tpu.memory_space<vmem>>, %arg4: memref<16x32xf32, #tpu.memory_space<vmem>>, %arg5: memref<16x32xf32, #tpu.memory_space<vmem>>, %arg6: memref<16x32xf32, #tpu.memory_space<vmem>>) attributes {dimension_semantics = [#tpu.dimension_semantics<parallel>], iteration_bounds = array<i64: 1>, scalar_prefetch = 0 : i64, scratch_operands = 0 : i64, tpu.core_type = #tpu.core_type<tc>, window_params = [{transform_indices = @transform_0, window_bounds = array<i64: 16, 32>}, {pipeline_mode = #tpu.pipeline_mode<synchronous>, transform_indices = @transform_1, window_bounds = array<i64: 32, 96>}, {pipeline_mode = #tpu.pipeline_mode<synchronous>, transform_indices = @transform_2, window_bounds = array<i64: 1, 96>}, {transform_indices = @transform_3, window_bounds = array<i64: 16, 32>}, {transform_indices = @transform_4, window_bounds = array<i64: 16, 32>}, {transform_indices = @transform_5, window_bounds = array<i64: 16, 32>}]} {
    %c0 = arith.constant 0 : index
    %c0_0 = arith.constant 0 : index
    %0 = vector.load %arg1[%c0, %c0_0] : memref<16x32xf32, #tpu.memory_space<vmem>>, vector<16x32xf32>
    %c0_1 = arith.constant 0 : index
    %c0_2 = arith.constant 0 : index
    %1 = vector.load %arg2[%c0_1, %c0_2] : memref<32x96xf32, #tpu.memory_space<vmem>>, vector<32x32xf32>
    %c0_3 = arith.constant 0 : index
    %c0_4 = arith.constant 0 : index
    %2 = vector.load %arg3[%c0_3, %c0_4] : memref<1x96xf32, #tpu.memory_space<vmem>>, vector<1x32xf32>
    %cst = arith.constant dense<0.000000e+00> : vector<16x32xf32>
    %3 = tpu.matmul %0, %1, %cst {dimension_numbers = #tpu.dot_dimension_numbers<[1], [0], [0], [1], [0, 0, 1, 1], [], []>} : vector<16x32xf32>, vector<32x32xf32>, vector<16x32xf32> -> vector<16x32xf32>
    %4 = vector.broadcast %2 : vector<1x32xf32> to vector<16x32xf32>
    %5 = arith.addf %3, %4 : vector<16x32xf32>
    %c0_5 = arith.constant 0 : index
    %c0_6 = arith.constant 0 : index
    %6 = vector.load %arg4[%c0_5, %c0_6] : memref<16x32xf32, #tpu.memory_space<vmem>>, vector<16x32xf32>
    tpu.vector_store %arg4[%c0_5, %c0_6], %5 {strides = array<i32>} : memref<16x32xf32, #tpu.memory_space<vmem>>, vector<16x32xf32>,
    %c0_7 = arith.constant 0 : index
    %c32 = arith.constant 32 : index
    %7 = vector.load %arg2[%c0_7, %c32] : memref<32x96xf32, #tpu.memory_space<vmem>>, vector<32x32xf32>
    %c0_8 = arith.constant 0 : index
    %c32_9 = arith.constant 32 : index
    %8 = vector.load %arg3[%c0_8, %c32_9] : memref<1x96xf32, #tpu.memory_space<vmem>>, vector<1x32xf32>
    %cst_10 = arith.constant dense<0.000000e+00> : vector<16x32xf32>
    %9 = tpu.matmul %0, %7, %cst_10 {dimension_numbers = #tpu.dot_dimension_numbers<[1], [0], [0], [1], [0, 0, 1, 1], [], []>} : vector<16x32xf32>, vector<32x32xf32>, vector<16x32xf32> -> vector<16x32xf32>
    %10 = vector.broadcast %8 : vector<1x32xf32> to vector<16x32xf32>
    %11 = arith.addf %9, %10 : vector<16x32xf32>
    %c0_11 = arith.constant 0 : index
    %c0_12 = arith.constant 0 : index
    %12 = vector.load %arg5[%c0_11, %c0_12] : memref<16x32xf32, #tpu.memory_space<vmem>>, vector<16x32xf32>
    tpu.vector_store %arg5[%c0_11, %c0_12], %11 {strides = array<i32>} : memref<16x32xf32, #tpu.memory_space<vmem>>, vector<16x32xf32>,
    %c0_13 = arith.constant 0 : index
    %c64 = arith.constant 64 : index
    %13 = vector.load %arg2[%c0_13, %c64] : memref<32x96xf32, #tpu.memory_space<vmem>>, vector<32x32xf32>
    %c0_14 = arith.constant 0 : index
    %c64_15 = arith.constant 64 : index
    %14 = vector.load %arg3[%c0_14, %c64_15] : memref<1x96xf32, #tpu.memory_space<vmem>>, vector<1x32xf32>
    %cst_16 = arith.constant dense<0.000000e+00> : vector<16x32xf32>
    %15 = tpu.matmul %0, %13, %cst_16 {dimension_numbers = #tpu.dot_dimension_numbers<[1], [0], [0], [1], [0, 0, 1, 1], [], []>} : vector<16x32xf32>, vector<32x32xf32>, vector<16x32xf32> -> vector<16x32xf32>
    %16 = vector.broadcast %14 : vector<1x32xf32> to vector<16x32xf32>
    %17 = arith.addf %15, %16 : vector<16x32xf32>
    %c0_17 = arith.constant 0 : index
    %c0_18 = arith.constant 0 : index
    %18 = vector.load %arg6[%c0_17, %c0_18] : memref<16x32xf32, #tpu.memory_space<vmem>>, vector<16x32xf32>
    tpu.vector_store %arg6[%c0_17, %c0_18], %17 {strides = array<i32>} : memref<16x32xf32, #tpu.memory_space<vmem>>, vector<16x32xf32>,
    return
  }
  func.func @transform_0(%arg0: i32) -> (i32, i32) {
    %c0_i32 = arith.constant 0 : i32
    %c0_i32_0 = arith.constant 0 : i32
    return %arg0, %c0_i32 : i32, i32
  }
  func.func @transform_1(%arg0: i32) -> (i32, i32) {
    %c0_i32 = arith.constant 0 : i32
    %c0_i32_0 = arith.constant 0 : i32
    %c0_i32_1 = arith.constant 0 : i32
    return %c0_i32, %c0_i32_0 : i32, i32
  }
  func.func @transform_2(%arg0: i32) -> (i32, i32) {
    %c0_i32 = arith.constant 0 : i32
    %c0_i32_0 = arith.constant 0 : i32
    %c0_i32_1 = arith.constant 0 : i32
    return %c0_i32, %c0_i32_0 : i32, i32
  }
  func.func @transform_3(%arg0: i32) -> (i32, i32) {
    %c0_i32 = arith.constant 0 : i32
    %c0_i32_0 = arith.constant 0 : i32
    return %arg0, %c0_i32 : i32, i32
  }
  func.func @transform_4(%arg0: i32) -> (i32, i32) {
    %c0_i32 = arith.constant 0 : i32
    %c0_i32_0 = arith.constant 0 : i32
    return %arg0, %c0_i32 : i32, i32
  }
  func.func @transform_5(%arg0: i32) -> (i32, i32) {
    %c0_i32 = arith.constant 0 : i32
    %c0_i32_0 = arith.constant 0 : i32
    return %arg0, %c0_i32 : i32, i32
  }
}

</mosaic_0001>

<bundles_post_ra>
// kernel: attention_forward.5
= control target key start
LH: loop header
LB: loop body
LE: loop exit
PB: predicated region body
PF: predicated region fallthrough
CT: control target
= control target key end

     0   :  { %vm28_vm0 = vcmask 261120   ;;  %s224_s0 = inlined_call_operand.vmem [shape: f32[16,32], index: 0, kind: input, shape index: {}]   ;;  %s225_s1 = inlined_call_operand.vmem [shape: f32[32,32], index: 1, kind: input, shape index: {}]   ;;  %s226_s2 = inlined_call_operand.vmem [shape: f32[1,32], index: 2, kind: input, shape index: {}]   ;;  %s227_s3 = inlined_call_operand.hbm [shape: f32[16,32], index: 3, kind: output, shape index: {}]  }
   0x1   :  { %v20_v0 = vld [vmem:[%s225_s1 + $0x18] sm:$0xff]  ;;  %v19_v1 = vld [vmem:[%s225_s1 + $0x10] sm:$0xff]  ;;  %v15_v2 = vld [vmem:[%s224_s0] sm:$0xff] }
   0x2   :  { %137 = vmatprep.subr.mxu0 %v20_v0  ;;  %v18_v3 = vld [vmem:[%s225_s1 + $0x8] sm:$0xff]  ;;  %145 = vmatprep.mubr.msk.f32.mxu0 %vm28_vm0, %v15_v2 }
   0x3   :  { %138 = vmatpush3.msra.mxu0 %v20_v0 }
   0x4   :  { %8 = vsyncpa [#allocation3], 0  ;;  %139 = vmatprep.subr.mxu0 %v19_v1  ;;  %v17_v4 = vld [vmem:[%s225_s1] sm:$0xff]  ;;  %v16_v5 = vld [vmem:[%s224_s0 + $0x8] sm:$0xff]  ;;  %s173_s26 = smov [#allocation2]  }
   0x5   :  { %140 = vmatpush3.msra.mxu0 %v19_v1  ;;  %v128_v6 = vld [vmem:[%s226_s2] ss:$0 sm:$0xff]  ;;  %s117_s27 = sshll.u32 %s173_s26, 4  ;;  %s118_s27 = int_to_ptr.vmem [resolvable:$true] %s117_s27 }
   0x6   :  { %141 = vmatprep.subr.mxu0 %v18_v3  ;;  %s151_s0 = scalar_lea.vmem %s118_s27, 256  ;;  %p156_p1 = scmp.lt.s32.totalorder %s118_s27, %s118_s27 }
   0x7   :  { %142 = vmatpush3.msra.mxu0 %v18_v3  ;;  %p152_p0 = scmp.ne.s32.totalorder %s118_s27, %s151_s0  ;;  %p157_p2 = scmp.lt.s32.totalorder %s151_s0, %s151_s0 }
   0x8   :  { %143 = vmatprep.subr.mxu0 %v17_v4 }
   0x9   :  { %144 = vmatpush3.msra.mxu0 %v17_v4  ;;  %p158_p3 = por %p157_p2, %p156_p1 }
   0xa   :  { %146 = vmatmul.mubr.msk.f32.vlgmr.msra.gmra.mxu0 %vm28_vm0, %v16_v5 }
   0xb   :  { %p159_p4 = pnand %p158_p3, %p152_p0 }
  0xca   :  { %v147_v7 = vpop.f32.mrf.mxu0 }
  0xcb   :  { %v107_v8 = vadd.f32 %v147_v7, %v128_v6 }
  0xcc   :  { %v101_v9 = vpop.f32.mrf.mxu0 }
  0xcd   :  { %111 = vst.msk [vmem:[#allocation2 + $0x8] sm:$0xff] %vm28_vm0, %v107_v8  ;;  %v102_v10 = vadd.f32 %v128_v6, %v101_v9 }
  0xcf   :  { %110 = vst.msk [vmem:[#allocation2] sm:$0xff] %vm28_vm0, %v102_v10 }
  0xd0   :  { %162 = shalt.err (!%p159_p4)
}
  0xd1   :  { %s174_s1 = smov 128   ;;  %s175_s2 = smov 8  }
  0xd2   :  { %123 = dma.vmem_to_hbm [thread:$0]  %s118_s27, 256, %s227_s3, [#allocation3], %s174_s1, %s174_s1, %s175_s2  }
  0xd3   :  { %171 = dma.done.wait [#allocation3], 256  }
  0xd4   :  { %172 = vsyncadd [#allocation3], 4294967040 }
  0xd5   :  { %127 = vsyncpa [#allocation3], 1 }

// kernel: attention_forward.3
= control target key start
LH: loop header
LB: loop body
LE: loop exit
PB: predicated region body
PF: predicated region fallthrough
CT: control target
= control target key end

     0   :  { %11 = vsyncpa [#allocation3], 0  ;;  %s553_s0 = inlined_call_operand.hbm [shape: f32[16,32], index: 0, kind: input, shape index: {}]   ;;  %s554_s1 = inlined_call_operand.hbm [shape: f32[32,96], index: 1, kind: input, shape index: {}]   ;;  %s555_s2 = inlined_call_operand.vmem [shape: f32[1,96], index: 2, kind: input, shape index: {}]   ;;  %s556_s3 = inlined_call_operand.vmem [shape: f32[16,32], index: 3, kind: output, shape index: {0}]   ;;  %s557_s4 = inlined_call_operand.vmem [shape: f32[16,32], index: 4, kind: output, shape index: {1}]   ;;  %s558_s5 = inlined_call_operand.vmem [shape: f32[16,32], index: 5, kind: output, shape index: {2}]  }
   0x1   :  { %12 = vsyncpa [#allocation5], 0  ;;  %s478_s18 = smov [#allocation2]  }
   0x2   :  { %s18_s19 = sshll.u32 %s478_s18, 4  ;;  %s19_s19 = int_to_ptr.vmem [resolvable:$true] %s18_s19 }
   0x3   :  { %s442_s20 = scalar_lea.vmem %s19_s19, 256  ;;  %p447_p1 = scmp.lt.s32.totalorder %s19_s19, %s19_s19 }
   0x4   :  { %p443_p0 = scmp.ne.s32.totalorder %s19_s19, %s442_s20  ;;  %p448_p2 = scmp.lt.s32.totalorder %s442_s20, %s442_s20 }
   0x6   :  { %p449_p3 = por %p448_p2, %p447_p1 }
   0x8   :  { %p450_p4 = pnand %p449_p3, %p443_p0 }
   0xa   :  { %453 = shalt.err (!%p450_p4)
}
   0xb   :  { %s479_s21 = smov 128   ;;  %s480_s22 = smov 8  }
   0xc   :  { %24 = dma.hbm_to_vmem [thread:$0]  %s553_s0, 256, %s19_s19, [#allocation3], %s479_s21, %s479_s21, %s480_s22  }
   0xd   :  { %s481_s25 = smov [#allocation4]  }
   0xe   :  { %s30_s26 = sshll.u32 %s481_s25, 4  ;;  %s31_s26 = int_to_ptr.vmem [resolvable:$true] %s30_s26 }
   0xf   :  { %s462_s27 = scalar_lea.vmem %s31_s26, 512  ;;  %p467_p6 = scmp.lt.s32.totalorder %s31_s26, %s31_s26 }
  0x10   :  { %p463_p5 = scmp.ne.s32.totalorder %s31_s26, %s462_s27  ;;  %p468_p7 = scmp.lt.s32.totalorder %s462_s27, %s462_s27 }
  0x12   :  { %p469_p8 = por %p468_p7, %p467_p6 }
  0x14   :  { %p470_p9 = pnand %p469_p8, %p463_p5 }
  0x16   :  { %473 = shalt.err (!%p470_p9)
}
  0x17   :  { %36 = dma.hbm_to_vmem [thread:$0]  %s554_s1, 512, %s31_s26, [#allocation5], %s479_s21, %s479_s21, %s480_s22  }
  0x18   :  { %474 = dma.done.wait [#allocation3], 256  }
  0x19   :  { %475 = vsyncadd [#allocation3], 4294967040 }
  0x1a   :  { %476 = dma.done.wait [#allocation5], 512  }
  0x1b   :  { %477 = vsyncadd [#allocation5], 4294966784  ;;  %vm58_vm0 = vcmask 261120   ;;  %v145_v0 = vld [vmem:[#allocation4 + $0x18] sm:$0xff]  ;;  %v144_v1 = vld [vmem:[#allocation4 + $0x10] sm:$0xff]  ;;  %s482_s0 = smov 96  }
  0x1c   :  { %162 = vrot.lane.b32.xlu0 %v145_v0, %s482_s0  ;;  %160 = vrot.lane.b32.xlu1 %v144_v1, %s482_s0  ;;  %v45_v2 = vld [vmem:[#allocation2] sm:$0xff]  ;;  %s483_s30 = smov 64   ;;  %v249_v3 = vld [vmem:[#allocation4 + $0x8] sm:$0xff]  ;;  %v248_v4 = vld [vmem:[#allocation4] sm:$0xff] }
  0x1d   :  { %395 = vmatprep.subr.mxu0 %v145_v0  ;;  %403 = vmatprep.mubr.msk.f32.mxu0 %vm58_vm0, %v45_v2  ;;  %v46_v5 = vld [vmem:[#allocation2 + $0x8] sm:$0xff]  ;;  %v374_v6 = vld [vmem:[%s555_s2] ss:$0 sm:$0xff] }
  0x1e   :  { %396 = vmatpush3.msra.mxu0 %v145_v0  ;;  %414 = vmatprep.mubr.msk.f32.mxu1 %vm58_vm0, %v45_v2 }
  0x1f   :  { %397 = vmatprep.subr.mxu0 %v144_v1 }
  0x20   :  { %268 = vrot.lane.b32.xlu0 %v145_v0, %s483_s30  ;;  %266 = vrot.lane.b32.xlu1 %v144_v1, %s483_s30 }
  0x21   :  { %398 = vmatpush3.msra.mxu0 %v144_v1 }
  0x22   :  { %399 = vmatprep.subr.mxu0 %v249_v3 }
  0x23   :  { %400 = vmatpush3.msra.mxu0 %v249_v3 }
  0x24   :  { %264 = vrot.lane.b32.xlu1 %v249_v3, %s483_s30  ;;  %158 = vrot.lane.b32.xlu0 %v249_v3, %s482_s0 }
  0x25   :  { %401 = vmatprep.subr.mxu0 %v248_v4 }
  0x26   :  { %402 = vmatpush3.msra.mxu0 %v248_v4 }
  0x27   :  { %404 = vmatmul.mubr.msk.f32.vlgmr.msra.gmra.mxu0 %vm58_vm0, %v46_v5 }
  0x28   :  { %262 = vrot.lane.b32.xlu1 %v248_v4, %s483_s30  ;;  %156 = vrot.lane.b32.xlu0 %v248_v4, %s482_s0 }
  0x29   :  { %425 = vmatprep.mubr.msk.f32.mxu0 %vm58_vm0, %v45_v2 }
  0x2c   :  { %274 = vrot.lane.b32.xlu1 %v374_v6, %s483_s30  ;;  %168 = vrot.lane.b32.xlu0 %v374_v6, %s482_s0 }
  0x8e   :  { %v163_v7 = vpop.permute.xlu0 %162  ;;  %v161_v8 = vpop.permute.xlu1 %160 }
  0x8f   :  { %406 = vmatprep.subr.mxu1 %v163_v7 }
  0x90   :  { %407 = vmatpush3.msra.mxu1 %v163_v7 }
  0x91   :  { %408 = vmatprep.subr.mxu1 %v161_v8 }
  0x92   :  { %v269_v9 = vpop.permute.xlu0 %268  ;;  %409 = vmatpush3.msra.mxu1 %v161_v8  ;;  %v267_v10 = vpop.permute.xlu1 %266 }
  0x93   :  { %417 = vmatprep.subr.mxu0 %v269_v9 }
  0x94   :  { %418 = vmatpush3.msra.mxu0 %v269_v9 }
  0x95   :  { %419 = vmatprep.subr.mxu0 %v267_v10 }
  0x96   :  { %v265_v11 = vpop.permute.xlu1 %264  ;;  %v159_v12 = vpop.permute.xlu0 %158  ;;  %420 = vmatpush3.msra.mxu0 %v267_v10 }
  0x97   :  { %410 = vmatprep.subr.mxu1 %v159_v12  ;;  %421 = vmatprep.subr.mxu0 %v265_v11 }
  0x98   :  { %411 = vmatpush3.msra.mxu1 %v159_v12  ;;  %422 = vmatpush3.msra.mxu0 %v265_v11 }
  0x9a   :  { %v263_v13 = vpop.permute.xlu1 %262  ;;  %v157_v14 = vpop.permute.xlu0 %156 }
  0x9b   :  { %412 = vmatprep.subr.mxu1 %v157_v14  ;;  %423 = vmatprep.subr.mxu0 %v263_v13 }
  0x9c   :  { %413 = vmatpush3.msra.mxu1 %v157_v14  ;;  %424 = vmatpush3.msra.mxu0 %v263_v13 }
  0x9d   :  { %415 = vmatmul.mubr.msk.f32.vlgmr.msra.gmra.mxu1 %vm58_vm0, %v46_v5  ;;  %426 = vmatmul.mubr.msk.f32.vlgmr.msra.gmra.mxu0 %vm58_vm0, %v46_v5 }
  0x9e   :  { %v275_v19 = vpop.permute.xlu1 %274  ;;  %v169_v20 = vpop.permute.xlu0 %168 }
  0xe7   :  { %v405_v15 = vpop.f32.mrf.mxu0 }
  0xe8   :  { %v137_v16 = vadd.f32 %v405_v15, %v374_v6 }
  0xe9   :  { %v131_v17 = vpop.f32.mrf.mxu0 }
  0xea   :  { %141 = vst.msk [vmem:[%s556_s3 + $0x8] sm:$0xff] %vm58_vm0, %v137_v16  ;;  %v132_v18 = vadd.f32 %v374_v6, %v131_v17 }
  0xec   :  { %140 = vst.msk [vmem:[%s556_s3] sm:$0xff] %vm58_vm0, %v132_v18 }
 0x15d   :  { %v416_v21 = vpop.f32.mrf.mxu1  ;;  %v427_v22 = vpop.f32.mrf.mxu0 }
 0x15e   :  { %v243_v23 = vadd.f32 %v416_v21, %v169_v20  ;;  %v349_v24 = vadd.f32 %v427_v22, %v275_v19 }
 0x15f   :  { %v237_v25 = vpop.f32.mrf.mxu1  ;;  %v343_v26 = vpop.f32.mrf.mxu0 }
 0x160   :  { %247 = vst.msk [vmem:[%s557_s4 + $0x8] sm:$0xff] %vm58_vm0, %v243_v23  ;;  %353 = vst.msk [vmem:[%s558_s5 + $0x8] sm:$0xff] %vm58_vm0, %v349_v24  ;;  %v238_v27 = vadd.f32 %v237_v25, %v169_v20  ;;  %v344_v28 = vadd.f32 %v343_v26, %v275_v19 }
 0x162   :  { %246 = vst.msk [vmem:[%s557_s4] sm:$0xff] %vm58_vm0, %v238_v27  ;;  %352 = vst.msk [vmem:[%s558_s5] sm:$0xff] %vm58_vm0, %v344_v28 }
 0x163   :  { %366 = vsyncpa [#allocation3], 1 }
 0x164   :  { %367 = vsyncpa [#allocation5], 1 }

// kernel: attention_forward.4
= control target key start
LH: loop header
LB: loop body
LE: loop exit
PB: predicated region body
PF: predicated region fallthrough
CT: control target
= control target key end

     0   :  { %10 = vsyncpa [#allocation3], 0  ;;  %s3738_s0 = inlined_call_operand.vmem [shape: f32[2,8,8,4], index: 0, kind: input, shape index: {}]   ;;  %s3739_s1 = inlined_call_operand.vmem [shape: f32[2,8,8,4], index: 1, kind: input, shape index: {}]   ;;  %s3740_s2 = inlined_call_operand.vmem [shape: f32[2,8,8,4], index: 2, kind: input, shape index: {}]   ;;  %s3741_s3 = inlined_call_operand.vmem [shape: f32[2,8,32], index: 3, kind: output, shape index: {0}]   ;;  %s3742_s4 = inlined_call_operand.hbm [shape: f32[2,8,8,8], index: 4, kind: output, shape index: {1}]  }
   0x1   :  { %12 = vsyncpa [#allocation3 + $0x1], 0  ;;  %s2942_s15 = smov 0   ;;  %s2944_s16 = smov 0  }
   0x2   :  { %s2946_s17 = smov 0   ;;  %s2948_s18 = smov 0  }
   0x3   :  { %s2950_s19 = smov 0   ;;  %s2952_s20 = smov 0  }
   0x4 LB: > { %s2566_s21 = sadd.s32 4294967295, %s2904_s20   ;;  %s2567_s22 = sadd.s32 4294967294, %s2904_s20   ;;  %s2904_s20 = sphi %s2952_s20, %s18_s20   ;;  %s2900_s19 = sphi %s2950_s19, %s3749_s19   ;;  %s2896_s18 = sphi %s2948_s18, %s3748_s18   ;;  %s2892_s17 = sphi %s2946_s17, %s3747_s17   ;;  %s2888_s16 = sphi %s2944_s16, %s3746_s16   ;;  %s2884_s15 = sphi %s2942_s15, %s3745_s15  }
   0x5   : > { %s30_s23 = sadd.s32 1, %s2900_s19  ;;  %s147_s24 = sadd.s32 1, %s2892_s17 }
   0x6   : > { %p32_p0 = scmp.ge.s32.totalorder %s30_s23, 2  ;;  %p157_p1 = scmp.ne.s32.totalorder %s2892_s17, %s2888_s16 }
   0x7   : > { %p158_p2 = scmp.eq.s32.totalorder %s2566_s21, 1  ;;  %p163_p3 = scmp.ne.s32.totalorder %s2888_s16, %s2884_s15 }
   0x8   : > { %s3751_s23 = smov (%p32_p0, %s30_s23), 0  ;;  %p164_p5 = scmp.eq.s32.totalorder %s2567_s22, 1 }
   0x9   : > { %p2982_p4 = por %p158_p2, %p157_p1  ;;  %s142_s26 = ssub.s32 %s2900_s19, %s3751_s23 }
   0xa   : > { %p2570_p6 = scmp.ge.s32.totalorder %s2904_s20, 1  ;;  %p145_p7 = scmp.eq.s32.totalorder %s142_s26, 0 }
   0xb   : > { %p2989_p8 = por %p164_p5, %p163_p3  ;;  %p211_p9 = scmp.lt.s32.totalorder %s2904_s20, 3 }
   0xc   : > { %s2995_s28 = scalar_select %p145_p7, %s2892_s17, %s147_s24  }
   0xd   : > { %p212_p10 = pnand %p2570_p6, %p211_p9 }
   0xe   : > { %p259_p11 = scmp.lt.s32.totalorder (!%p212_p10), %s2896_s18, 1  ;;  %s255_s14 = sand.u32 (!%p212_p10), 1, %s2888_s16  }
   0xf   : > { %215 = sbr.rel (%p212_p10) target bundleno = 1398 (0x576), region = 32  ;;  %s3261_s21 = sshll.u32 (!%p212_p10), %s255_s14, 6 }
  0x10   : > { %s3356_s22 = scalar_lea.vmem (!%p212_p10), [#allocation2], %s3261_s21  ;;  %s2909_s6 = smov (!%p212_p10), 8  }
  0x11   : > { %s2618_s8 = sshll.u32 (!%p212_p10), %s2896_s18, 10  ;;  %s2433_s9 = sshll.u32 (!%p212_p10), %s3356_s22, 4  ;;  %s3681_s9 = int_to_ptr.vmem [resolvable:$true] %s2433_s9 }
  0x12   : > { %s3679_s12 = scalar_lea.hbm (!%p212_p10), %s3742_s4, %s2618_s8  ;;  %s3685_s21 = scalar_lea.sflag (!%p212_p10), [#allocation3], %s255_s14 }
  0x14   : > { %v2906_v0 = vmov 0.0   ;;  %s3001_s29 = scalar_select %p259_p11, %s2896_s18, 1  ;;  %vm2907_vm0 = vmmov 0   ;;  %vm326_vm1 = vcmask 1041409   ;;  %vm329_vm2 = vcmask 1042434  }
  0x15   : > { %2651 = vmatprep.subr.mxu0 %v2906_v0  ;;  %2656 = vmatprep.subr.mxu1 %v2906_v0  ;;  %vm332_vm3 = vcmask 1043459   ;;  %vm335_vm4 = vcmask 1044484   ;;  %vm338_vm5 = vcmask 1045509   ;;  %vm341_vm6 = vcmask 1046534   ;;  %s2912_s18 = smov [#allocation2]  }
  0x16   : > { %2653 = vmatprep.mubr.msk.f32.mxu0 %vm2907_vm0, %v2906_v0  ;;  %2658 = vmatprep.mubr.msk.f32.mxu1 %vm2907_vm0, %v2906_v0  ;;  %s3008_s30 = sshll.u32 %s3001_s29, 6  ;;  %vm344_vm7 = vcmask 1047559   ;;  %vm368_vm8 = vcmask 31744   ;;  %vm443_vm9 = vcmask 64512   ;;  %s2578_s24 = sshll.u32 %s3001_s29, 3 }
  0x17   : > { %s3014_s7 = scalar_lea.vmem %s3739_s1, %s3008_s30  ;;  %s3026_s10 = scalar_lea.vmem %s3738_s0, %s3008_s30 }
  0x18   : > { %v301_v1 = vld [vmem:[%s3014_s7] sm:$0x1]  ;;  %v302_v2 = vld [vmem:[%s3014_s7 + $0x8] sm:$0x1]  ;;  %v303_v3 = vld [vmem:[%s3014_s7 + $0x10] sm:$0x1]  ;;  %s3066_s13 = scalar_lea.vmem %s3740_s2, %s3008_s30  ;;  %s3483_s5 = scalar_lea.vmem %s3741_s3, %s2578_s24 }
  0x19   : > { %v304_v4 = vld [vmem:[%s3014_s7 + $0x18] sm:$0x1]  ;;  %v305_v5 = vld [vmem:[%s3014_s7 + $0x20] sm:$0x1]  ;;  %v306_v6 = vld [vmem:[%s3014_s7 + $0x28] sm:$0x1] }
  0x1a   : > { %v307_v7 = vld [vmem:[%s3014_s7 + $0x30] sm:$0x1]  ;;  %v308_v8 = vld [vmem:[%s3014_s7 + $0x38] sm:$0x1]  ;;  %v354_v9 = vrot.slane %v302_v2, 7  ;;  %v356_v10 = vrot.slane %v303_v3, 6 }
  0x1b   : > { %v358_v11 = vrot.slane %v304_v4, 5  ;;  %v360_v12 = vrot.slane %v305_v5, 4  ;;  %v362_v13 = vrot.slane %v306_v6, 3  ;;  %v364_v14 = vrot.slane %v307_v7, 2  ;;  %v285_v15 = vld [vmem:[%s3026_s10] sm:$0x1] }
  0x1c   : > { %v355_v16 = vsel %vm326_vm1, %v354_v9, %v301_v1  ;;  %v366_v17 = vrot.slane %v308_v8, 1  ;;  %v286_v18 = vld [vmem:[%s3026_s10 + $0x8] sm:$0x1]  ;;  %v287_v19 = vld [vmem:[%s3026_s10 + $0x10] sm:$0x1]  ;;  %v293_v20 = vmul.f32 0.5, %v285_v15 }
  0x1d   : > { %v357_v21 = vsel %vm329_vm2, %v356_v10, %v355_v16  ;;  %v288_v22 = vld [vmem:[%s3026_s10 + $0x18] sm:$0x1]  ;;  %v289_v23 = vld [vmem:[%s3026_s10 + $0x20] sm:$0x1]  ;;  %v290_v24 = vld [vmem:[%s3026_s10 + $0x28] sm:$0x1] }
  0x1e   : > { %v359_v25 = vsel %vm332_vm3, %v358_v11, %v357_v21  ;;  %v291_v26 = vld [vmem:[%s3026_s10 + $0x30] sm:$0x1]  ;;  %v292_v27 = vld [vmem:[%s3026_s10 + $0x38] sm:$0x1]  ;;  %v294_v28 = vmul.f32 0.5, %v286_v18  ;;  %v295_v29 = vmul.f32 0.5, %v287_v19 }
  0x1f   : > { %v361_v30 = vsel %vm335_vm4, %v360_v12, %v359_v25  ;;  %v296_v31 = vmul.f32 0.5, %v288_v22  ;;  %v297_v32 = vmul.f32 0.5, %v289_v23  ;;  %v298_v33 = vmul.f32 0.5, %v290_v24  ;;  %v309_v61 = vld [vmem:[%s3066_s13] sm:$0x1]  ;;  %s2908_s29 = smov 4  }
  0x20   : > { %v363_v34 = vsel %vm338_vm5, %v362_v13, %v361_v30  ;;  %v299_v35 = vmul.f32 0.5, %v291_v26  ;;  %v300_v36 = vmul.f32 0.5, %v292_v27  ;;  %v325_v37 = vrot.slane %v294_v28, 7  ;;  %v310_v62 = vld [vmem:[%s3066_s13 + $0x8] sm:$0x1]  ;;  %s2828_s24 = scalar_lea.vmem %s3681_s9, 1024 }
  0x21   : > { %v365_v38 = vsel %vm341_vm6, %v364_v14, %v363_v34  ;;  %v328_v39 = vrot.slane %v295_v29, 6  ;;  %v331_v40 = vrot.slane %v296_v31, 5  ;;  %v334_v41 = vrot.slane %v297_v32, 4  ;;  %v311_v63 = vld [vmem:[%s3066_s13 + $0x10] sm:$0x1]  ;;  %p2829_p12 = scmp.ne.s32.totalorder %s3681_s9, %s2828_s24 }
  0x22   : > { %v367_v42 = vsel %vm344_vm7, %v366_v17, %v365_v38  ;;  %v327_v43 = vsel %vm326_vm1, %v325_v37, %v293_v20  ;;  %v337_v44 = vrot.slane %v298_v33, 3  ;;  %v340_v46 = vrot.slane %v299_v35, 2  ;;  %v312_v1 = vld [vmem:[%s3066_s13 + $0x18] sm:$0x1]  ;;  %v313_v2 = vld [vmem:[%s3066_s13 + $0x20] sm:$0x1] }
  0x23   : > { %2652 = vmatpush3.xpose.msk.msra.mxu0 %vm368_vm8, %v367_v42  ;;  %v330_v45 = vsel %vm329_vm2, %v328_v39, %v327_v43  ;;  %v343_v48 = vrot.slane %v300_v36, 1  ;;  %v314_v3 = vld [vmem:[%s3066_s13 + $0x28] sm:$0x1]  ;;  %v315_v4 = vld [vmem:[%s3066_s13 + $0x30] sm:$0x1]  ;;  %v464_v5 = vrot.slane %v310_v62, 7  ;;  %p2830_p13 = pnand %p2829_p12, %p2982_p4 }
  0x24   : > { %v333_v47 = vsel %vm332_vm3, %v331_v40, %v330_v45  ;;  %2666 = vmatprep.subr.mxu0 %v2906_v0  ;;  %v466_v6 = vrot.slane %v311_v63, 6  ;;  %v316_v7 = vld [vmem:[%s3066_s13 + $0x38] sm:$0x1]  ;;  %v468_v8 = vrot.slane %v312_v1, 5  ;;  %v470_v9 = vrot.slane %v313_v2, 4 }
  0x25   : > { %v336_v49 = vsel %vm335_vm4, %v334_v41, %v333_v47  ;;  %v465_v10 = vsel %vm326_vm1, %v464_v5, %v309_v61  ;;  %v472_v11 = vrot.slane %v314_v3, 3  ;;  %v474_v13 = vrot.slane %v315_v4, 2  ;;  %v570_v20 = vld [vmem:[%s3014_s7 + $0x9] sm:$0x1]  ;;  %v571_v22 = vld [vmem:[%s3014_s7 + $0x11] sm:$0x1]  ;;  %p2831_p0 = pneg %p2830_p13 }
  0x26   : > { %v339_v50 = vsel %vm338_vm5, %v337_v44, %v336_v49  ;;  %v467_v12 = vsel %vm329_vm2, %v466_v6, %v465_v10  ;;  %v476_v15 = vrot.slane %v316_v7, 1  ;;  %v554_v21 = vld [vmem:[%s3026_s10 + $0x9] sm:$0x1]  ;;  %v615_v23 = vrot.slane %v570_v20, 7  ;;  %v569_v24 = vld [vmem:[%s3014_s7 + $0x1] sm:$0x1] }
  0x27   : > { %v342_v51 = vsel %vm341_vm6, %v340_v46, %v339_v50  ;;  %v469_v14 = vsel %vm332_vm3, %v468_v8, %v467_v12  ;;  %v555_v25 = vld [vmem:[%s3026_s10 + $0x11] sm:$0x1]  ;;  %v562_v26 = vmul.f32 0.5, %v554_v21  ;;  %v572_v27 = vld [vmem:[%s3014_s7 + $0x19] sm:$0x1]  ;;  %v617_v28 = vrot.slane %v571_v22, 6 }
  0x28   : > { %v345_v52 = vsel %vm344_vm7, %v343_v48, %v342_v51  ;;  %v471_v16 = vsel %vm335_vm4, %v470_v9, %v469_v14  ;;  %v553_v29 = vld [vmem:[%s3026_s10 + $0x1] sm:$0x1]  ;;  %v616_v31 = vsel %vm326_vm1, %v615_v23, %v569_v24  ;;  %v556_v32 = vld [vmem:[%s3026_s10 + $0x19] sm:$0x1]  ;;  %v563_v34 = vmul.f32 0.5, %v555_v25 }
  0x29   : > { %2654 = vmatmul.mubr.msk.f32.vlgmr.msra.gmra.mxu0 %vm368_vm8, %v345_v52  ;;  %v473_v17 = vsel %vm338_vm5, %v472_v11, %v471_v16  ;;  %v573_v30 = vld [vmem:[%s3014_s7 + $0x21] sm:$0x1]  ;;  %v619_v35 = vrot.slane %v572_v27, 5  ;;  %v558_v36 = vld [vmem:[%s3026_s10 + $0x29] sm:$0x1]  ;;  %v561_v37 = vmul.f32 0.5, %v553_v29  ;;  %v618_v40 = vsel %vm329_vm2, %v617_v28, %v616_v31 }
  0x2a   : > { %2668 = vmatprep.mubr.msk.f32.mxu0 %vm2907_vm0, %v2906_v0  ;;  %v475_v18 = vsel %vm341_vm6, %v474_v13, %v473_v17  ;;  %v557_v33 = vld [vmem:[%s3026_s10 + $0x21] sm:$0x1]  ;;  %v593_v38 = vrot.slane %v562_v26, 7  ;;  %v574_v39 = vld [vmem:[%s3014_s7 + $0x29] sm:$0x1]  ;;  %v621_v44 = vrot.slane %v573_v30, 4 }
  0x2b   : > { %v477_v19 = vsel %vm344_vm7, %v476_v15, %v475_v18  ;;  %v559_v41 = vld [vmem:[%s3026_s10 + $0x31] sm:$0x1]  ;;  %v835_v42 = vld [vmem:[%s3014_s7 + $0xa] sm:$0x1]  ;;  %v564_v45 = vmul.f32 0.5, %v556_v32  ;;  %v565_v46 = vmul.f32 0.5, %v557_v33  ;;  %v620_v51 = vsel %vm332_vm3, %v619_v35, %v618_v40 }
  0x2c   : > { %2657 = vmatpush3.msra.mxu1 %v477_v19  ;;  %v3101_v43 = vld [vmem:[%s3014_s7 + $0x31] sm:$0x1]  ;;  %v3104_v47 = vld [vmem:[%s3014_s7 + $0x39] sm:$0x1]  ;;  %v3107_v49 = vmul.f32 0.5, %v558_v36  ;;  %v595_v50 = vrot.slane %v563_v34, 6  ;;  %v622_v3 = vsel %vm335_vm4, %v621_v44, %v620_v51 }
  0x2d   : > { %2661 = vmatprep.subr.mxu1 %v2906_v0  ;;  %v560_v48 = vld [vmem:[%s3026_s10 + $0x39] sm:$0x1]  ;;  %v3110_v52 = vmul.f32 0.5, %v559_v41  ;;  %v627_v61 = vrot.slane %v3104_v47, 1  ;;  %v597_v63 = vrot.slane %v564_v45, 5  ;;  %v599_v1 = vrot.slane %v565_v46, 4 }
  0x2e   : > { %v3118_v62 = vmul.f32 0.5, %v560_v48  ;;  %v837_v2 = vld [vmem:[%s3014_s7 + $0x1a] sm:$0x1]  ;;  %v601_v5 = vrot.slane %v3107_v49, 3  ;;  %v820_v7 = vld [vmem:[%s3026_s10 + $0x12] sm:$0x1] }
  0x2f   : > { %v821_v8 = vld [vmem:[%s3026_s10 + $0x1a] sm:$0x1]  ;;  %v603_v9 = vrot.slane %v3110_v52, 2  ;;  %v838_v10 = vld [vmem:[%s3014_s7 + $0x22] sm:$0x1]  ;;  %v884_v22 = vrot.slane %v837_v2, 5 }
  0x30   : > { %v822_v12 = vld [vmem:[%s3026_s10 + $0x22] sm:$0x1]  ;;  %v823_v13 = vld [vmem:[%s3026_s10 + $0x2a] sm:$0x1]  ;;  %v824_v17 = vld [vmem:[%s3026_s10 + $0x32] sm:$0x1] }
  0x31   : > { %v3132_v15 = vld [vmem:[%s3014_s7 + $0x2a] sm:$0x1]  ;;  %v818_v16 = vld [vmem:[%s3026_s10 + $0x2] sm:$0x1]  ;;  %v3139_v20 = vld [vmem:[%s3014_s7 + $0x32] sm:$0x1] }
  0x32   : > { %v3142_v21 = vld [vmem:[%s3014_s7 + $0x3a] sm:$0x1]  ;;  %v828_v23 = vmul.f32 0.5, %v820_v7  ;;  %v829_v26 = vmul.f32 0.5, %v821_v8  ;;  %v3146_v27 = vmul.f32 0.5, %v822_v12  ;;  %v3148_v28 = vmul.f32 0.5, %v823_v13 }
  0x33   : > { %v825_v25 = vld [vmem:[%s3026_s10 + $0x3a] sm:$0x1]  ;;  %v605_v29 = vrot.slane %v3118_v62, 1  ;;  %v826_v30 = vmul.f32 0.5, %v818_v16  ;;  %v3151_v31 = vmul.f32 0.5, %v824_v17  ;;  %v886_v35 = vrot.slane %v838_v10, 4 }
  0x34   : > { %v1084_v33 = vld [vmem:[%s3026_s10 + $0xb] sm:$0x1]  ;;  %v888_v36 = vrot.slane %v3132_v15, 3  ;;  %v892_v40 = vrot.slane %v3142_v21, 1  ;;  %v3160_v41 = vmul.f32 0.5, %v825_v25  ;;  %v864_v44 = vrot.slane %v3146_v27, 4 }
  0x35   : > { %v866_v45 = vrot.slane %v3148_v28, 3  ;;  %v1099_v46 = vld [vmem:[%s3014_s7 + $0x3] sm:$0x1]  ;;  %v1085_v48 = vld [vmem:[%s3026_s10 + $0x13] sm:$0x1]  ;;  %v1092_v49 = vmul.f32 0.5, %v1084_v33 }
  0x36   : > { %v868_v51 = vrot.slane %v3151_v31, 2  ;;  %v1093_v7 = vmul.f32 0.5, %v1085_v48  ;;  %v3188_v13 = vld [vmem:[%s3014_s7 + $0x3b] sm:$0x1]  ;;  %v1365_v15 = vld [vmem:[%s3014_s7 + $0xc] sm:$0x1] }
  0x37   : > { %v1123_v12 = vrot.slane %v1092_v49, 7  ;;  %v1350_v16 = vld [vmem:[%s3026_s10 + $0x14] sm:$0x1]  ;;  %v1364_v52 = vld [vmem:[%s3014_s7 + $0x4] sm:$0x1]  ;;  %v1410_v33 = vrot.slane %v1365_v15, 7 }
  0x38   : > { %v1125_v27 = vrot.slane %v1093_v7, 6  ;;  %v1157_v49 = vrot.slane %v3188_v13, 1  ;;  %v1368_v15 = vld [vmem:[%s3014_s7 + $0x24] sm:$0x1]  ;;  %v3302_v62 = vld [vmem:[%s3014_s7 + $0x3d] sm:$0x1] }
  0x39   : > { %v1895_v31 = vld [vmem:[%s3014_s7 + $0xe] sm:$0x1] }
  0xe9   : > { %v439_v53 = vpop.f32.mrf.mxu0 }
  0xea   : > { %v444_v54 = vsel %vm443_vm9, %v439_v53, -inf }
  0xeb   : > { %445 = vmax.xlane.f32.xlu0 %v444_v54  ;;  %v2655_v55 = vpop.f32.mrf.mxu0  ;;  %v836_v54 = vld [vmem:[%s3014_s7 + $0x12] sm:$0x1] }
  0xec   : > { %v880_v55 = vrot.slane %v835_v42, 7  ;;  %v882_v6 = vrot.slane %v836_v54, 6  ;;  %v860_v42 = vrot.slane %v828_v23, 6 }
 0x174   : > { %v446_v56 = vpop.xlane.xlu0 %445 }
 0x175   : > { %v447_v57 = vsub.f32 %v439_v53, %v446_v56  ;;  %v594_v53 = vsel %vm326_vm1, %v593_v38, %v561_v37  ;;  %v623_v56 = vrot.slane %v574_v39, 3  ;;  %v890_v37 = vrot.slane %v3139_v20, 2  ;;  %v1100_v38 = vld [vmem:[%s3014_s7 + $0xb] sm:$0x1] }
 0x176   : > { %v596_v4 = vsel %vm329_vm2, %v595_v50, %v594_v53  ;;  %v1101_v53 = vld [vmem:[%s3014_s7 + $0x13] sm:$0x1]  ;;  %v1145_v54 = vrot.slane %v1100_v38, 7 }
 0x177   : > { %v448_v58 = vmul.f32 1.442695, %v447_v57  ;;  %v625_v57 = vrot.slane %v3101_v43, 2  ;;  %v624_v18 = vsel %vm338_vm5, %v623_v56, %v622_v3  ;;  %v598_v19 = vsel %vm332_vm3, %v597_v63, %v596_v4  ;;  %v1349_v63 = vld [vmem:[%s3026_s10 + $0xc] sm:$0x1] }
 0x178   : > { %v600_v34 = vsel %vm335_vm4, %v599_v1, %v598_v19  ;;  %v862_v43 = vrot.slane %v829_v26, 5  ;;  %v870_v3 = vrot.slane %v3160_v41, 1  ;;  %v3180_v4 = vld [vmem:[%s3014_s7 + $0x2b] sm:$0x1]  ;;  %v1147_v10 = vrot.slane %v1101_v53, 6 }
 0x179   : > { %2796 = vpow2.f32 %v448_v58  ;;  %v834_v58 = vld [vmem:[%s3014_s7 + $0x2] sm:$0x1]  ;;  %v626_v56 = vsel %vm341_vm6, %v625_v57, %v624_v18  ;;  %v602_v1 = vsel %vm338_vm5, %v601_v5, %v600_v34  ;;  %v3185_v57 = vld [vmem:[%s3014_s7 + $0x33] sm:$0x1]  ;;  %v1146_v5 = vsel %vm326_vm1, %v1145_v54, %v1099_v46  ;;  %v1351_v34 = vld [vmem:[%s3026_s10 + $0x1c] sm:$0x1] }
 0x17a   : > { %v881_v11 = vsel %vm326_vm1, %v880_v55, %v834_v58  ;;  %v1083_v55 = vld [vmem:[%s3026_s10 + $0x3] sm:$0x1]  ;;  %v1102_v58 = vld [vmem:[%s3014_s7 + $0x1b] sm:$0x1]  ;;  %v1357_v17 = vmul.f32 0.5, %v1349_v63  ;;  %v3196_v18 = vsel %vm344_vm7, %v627_v61, %v626_v56  ;;  %v3201_v19 = vsel %vm341_vm6, %v603_v9, %v602_v1 }
 0x17b   : > { %v883_v24 = vsel %vm329_vm2, %v882_v6, %v881_v11  ;;  %v1086_v6 = vld [vmem:[%s3026_s10 + $0x1b] sm:$0x1]  ;;  %v1091_v11 = vmul.f32 0.5, %v1083_v55  ;;  %v1153_v47 = vrot.slane %v3180_v4, 3  ;;  %v1088_v61 = vld [vmem:[%s3026_s10 + $0x2b] sm:$0x1]  ;;  %v1148_v9 = vsel %vm329_vm2, %v1147_v10, %v1146_v5 }
 0x17c   : > { %v885_v39 = vsel %vm332_vm3, %v884_v22, %v883_v24  ;;  %v1087_v22 = vld [vmem:[%s3026_s10 + $0x23] sm:$0x1]  ;;  %v1094_v23 = vmul.f32 0.5, %v1086_v6  ;;  %v1348_v24 = vld [vmem:[%s3026_s10 + $0x4] sm:$0x1]  ;;  %v1359_v1 = vmul.f32 0.5, %v1351_v34 }
 0x17d   : > { %v887_v2 = vsel %vm335_vm4, %v886_v35, %v885_v39  ;;  %v1358_v35 = vmul.f32 0.5, %v1350_v16  ;;  %v1095_v38 = vmul.f32 0.5, %v1087_v22  ;;  %v1356_v39 = vmul.f32 0.5, %v1348_v24  ;;  %v1090_v53 = vld [vmem:[%s3026_s10 + $0x3b] sm:$0x1] }
 0x17e   : > { %v889_v25 = vsel %vm338_vm5, %v888_v36, %v887_v2  ;;  %v1155_v36 = vrot.slane %v3185_v57, 2  ;;  %v1127_v54 = vrot.slane %v1094_v23, 5  ;;  %v1352_v63 = vld [vmem:[%s3026_s10 + $0x24] sm:$0x1]  ;;  %v1631_v4 = vld [vmem:[%s3014_s7 + $0x15] sm:$0x1] }
 0x17f   : > { %v3218_v46 = vsel %vm341_vm6, %v890_v37, %v889_v25  ;;  %v1096_v37 = vmul.f32 0.5, %v1088_v61  ;;  %v1390_v2 = vrot.slane %v1358_v35, 6  ;;  %v1129_v10 = vrot.slane %v1095_v38, 4  ;;  %v3256_v34 = vld [vmem:[%s3014_s7 + $0x3c] sm:$0x1] }
 0x180   : > { %v1360_v22 = vmul.f32 0.5, %v1352_v63  ;;  %v1392_v61 = vrot.slane %v1359_v1, 5  ;;  %v1416_v35 = vrot.slane %v1368_v15, 4  ;;  %v1355_v38 = vld [vmem:[%s3026_s10 + $0x3c] sm:$0x1]  ;;  %v3287_v15 = vsel %vm344_vm7, %v605_v29, %v3201_v19 }
 0x181   : > { %v1613_v29 = vld [vmem:[%s3026_s10 + $0x5] sm:$0x1]  ;;  %v1616_v19 = vld [vmem:[%s3026_s10 + $0x1d] sm:$0x1] }
 0x186   : > { %v3058_v59 = vpop.eup %2796 }
 0x187   : > { %v450_v60 = vsel %vm443_vm9, %v3058_v59, 0.0 }
 0x188   : > { %451 = vadd.xlane.f32.xlu0 %v450_v60  ;;  %v819_v60 = vld [vmem:[%s3026_s10 + $0xa] sm:$0x1] }
 0x189   : > { %v827_v14 = vmul.f32 0.5, %v819_v60  ;;  %v3173_v60 = vld [vmem:[%s3014_s7 + $0x23] sm:$0x1] }
 0x18a   : > { %v1151_v20 = vrot.slane %v3173_v60, 4 }
 0x18b   : > { %v858_v32 = vrot.slane %v827_v14, 7  ;;  %v1149_v14 = vrot.slane %v1102_v58, 5  ;;  %v1367_v58 = vld [vmem:[%s3014_s7 + $0x1c] sm:$0x1] }
 0x18c   : > { %v1414_v16 = vrot.slane %v1367_v58, 5  ;;  %v1614_v58 = vld [vmem:[%s3026_s10 + $0xd] sm:$0x1] }
 0x18d   : > { %v859_v50 = vsel %vm326_vm1, %v858_v32, %v826_v30  ;;  %v1124_v30 = vsel %vm326_vm1, %v1123_v12, %v1091_v11  ;;  %v1366_v32 = vld [vmem:[%s3014_s7 + $0x14] sm:$0x1]  ;;  %v1150_v55 = vsel %vm332_vm3, %v1149_v14, %v1148_v9  ;;  %v1629_v12 = vld [vmem:[%s3014_s7 + $0x5] sm:$0x1]  ;;  %v1369_v9 = vld [vmem:[%s3014_s7 + $0x2c] sm:$0x1] }
 0x18e   : > { %v861_v8 = vsel %vm329_vm2, %v860_v42, %v859_v50  ;;  %v1388_v42 = vrot.slane %v1357_v17, 7  ;;  %v1089_v50 = vld [vmem:[%s3026_s10 + $0x33] sm:$0x1]  ;;  %v1126_v56 = vsel %vm329_vm2, %v1125_v27, %v1124_v30  ;;  %v1412_v60 = vrot.slane %v1366_v32, 6  ;;  %v1353_v17 = vld [vmem:[%s3026_s10 + $0x2c] sm:$0x1] }
 0x18f   : > { %v863_v26 = vsel %vm332_vm3, %v862_v43, %v861_v8  ;;  %v1630_v43 = vld [vmem:[%s3014_s7 + $0xd] sm:$0x1]  ;;  %v3231_v7 = vmul.f32 0.5, %v1089_v50  ;;  %v3233_v8 = vmul.f32 0.5, %v1090_v53  ;;  %v1152_v5 = vsel %vm335_vm4, %v1151_v20, %v1150_v55  ;;  %v1632_v20 = vld [vmem:[%s3014_s7 + $0x1d] sm:$0x1] }
 0x190   : > { %v865_v48 = vsel %vm335_vm4, %v864_v44, %v863_v26  ;;  %v1411_v44 = vsel %vm326_vm1, %v1410_v33, %v1364_v52  ;;  %v1675_v6 = vrot.slane %v1630_v43, 7  ;;  %v1389_v11 = vsel %vm326_vm1, %v1388_v42, %v1356_v39  ;;  %v1354_v26 = vld [vmem:[%s3026_s10 + $0x34] sm:$0x1]  ;;  %v1633_v50 = vld [vmem:[%s3014_s7 + $0x25] sm:$0x1] }
 0x191   : > { %v1128_v14 = vsel %vm332_vm3, %v1127_v54, %v1126_v56  ;;  %v867_v24 = vsel %vm338_vm5, %v866_v45, %v865_v48  ;;  %v1413_v25 = vsel %vm329_vm2, %v1412_v60, %v1411_v44  ;;  %v1677_v27 = vrot.slane %v1631_v4, 6  ;;  %v3249_v30 = vld [vmem:[%s3014_s7 + $0x34] sm:$0x1] }
 0x192   : > { %v1131_v52 = vrot.slane %v1096_v37, 3  ;;  %v1391_v32 = vsel %vm329_vm2, %v1390_v2, %v1389_v11  ;;  %v1676_v28 = vsel %vm326_vm1, %v1675_v6, %v1629_v12  ;;  %v1154_v45 = vsel %vm338_vm5, %v1153_v47, %v1152_v5  ;;  %v1634_v6 = vld [vmem:[%s3014_s7 + $0x2d] sm:$0x1]  ;;  %v3279_v11 = vld [vmem:[%s3014_s7 + $0x35] sm:$0x1] }
 0x193   : > { %v1130_v33 = vsel %vm335_vm4, %v1129_v10, %v1128_v14  ;;  %v1361_v39 = vmul.f32 0.5, %v1353_v17  ;;  %v1415_v42 = vsel %vm332_vm3, %v1414_v16, %v1413_v25  ;;  %v1362_v43 = vmul.f32 0.5, %v1354_v26  ;;  %v1615_v5 = vld [vmem:[%s3026_s10 + $0x15] sm:$0x1]  ;;  %v1617_v25 = vld [vmem:[%s3026_s10 + $0x25] sm:$0x1] }
 0x194   : > { %v1394_v48 = vrot.slane %v1360_v22, 4  ;;  %v1679_v53 = vrot.slane %v1632_v20, 5  ;;  %v1133_v47 = vrot.slane %v3231_v7, 2  ;;  %v1135_v54 = vrot.slane %v3233_v8, 1  ;;  %v1618_v26 = vld [vmem:[%s3026_s10 + $0x2d] sm:$0x1] }
 0x195   : > { %v1393_v55 = vsel %vm332_vm3, %v1392_v61, %v1391_v32  ;;  %v1678_v56 = vsel %vm329_vm2, %v1677_v27, %v1676_v28  ;;  %v1132_v60 = vsel %vm338_vm5, %v1131_v52, %v1130_v33  ;;  %v1418_v63 = vrot.slane %v1369_v9, 3  ;;  %v1619_v27 = vld [vmem:[%s3026_s10 + $0x35] sm:$0x1]  ;;  %v1896_v33 = vld [vmem:[%s3014_s7 + $0x16] sm:$0x1] }
 0x196   : > { %v1420_v1 = vrot.slane %v3249_v30, 2  ;;  %v3272_v37 = vmul.f32 0.5, %v1355_v38  ;;  %v1417_v44 = vsel %vm335_vm4, %v1416_v35, %v1415_v42  ;;  %v1422_v2 = vrot.slane %v3256_v34, 1  ;;  %v1880_v38 = vld [vmem:[%s3026_s10 + $0x16] sm:$0x1] }
 0x197   : > { %v1396_v4 = vrot.slane %v1361_v39, 3  ;;  %v1681_v7 = vrot.slane %v1633_v50, 4  ;;  %v1395_v8 = vsel %vm335_vm4, %v1394_v48, %v1393_v55  ;;  %v1398_v10 = vrot.slane %v1362_v43, 2  ;;  %v1894_v43 = vld [vmem:[%s3014_s7 + $0x6] sm:$0x1] }
 0x198   : > { %v1680_v12 = vsel %vm332_vm3, %v1679_v53, %v1678_v56  ;;  %v1622_v14 = vmul.f32 0.5, %v1614_v58  ;;  %v3293_v16 = vsel %vm344_vm7, %v892_v40, %v3218_v46  ;;  %v869_v17 = vsel %vm341_vm6, %v868_v51, %v867_v24  ;;  %v1879_v51 = vld [vmem:[%s3026_s10 + $0xe] sm:$0x1]  ;;  %v2144_v48 = vld [vmem:[%s3026_s10 + $0xf] sm:$0x1] }
 0x199   : > { %v1156_v22 = vsel %vm341_vm6, %v1155_v36, %v1154_v45  ;;  %v1134_v21 = vsel %vm341_vm6, %v1133_v47, %v1132_v60  ;;  %v1400_v40 = vrot.slane %v3272_v37, 1  ;;  %v1683_v46 = vrot.slane %v1634_v6, 3  ;;  %v1620_v45 = vld [vmem:[%s3026_s10 + $0x3d] sm:$0x1]  ;;  %v2160_v56 = vld [vmem:[%s3014_s7 + $0xf] sm:$0x1] }
 0x19a   : > { %v1397_v57 = vsel %vm338_vm5, %v1396_v4, %v1395_v8  ;;  %v1682_v36 = vsel %vm335_vm4, %v1681_v7, %v1680_v12  ;;  %v1685_v24 = vrot.slane %v3279_v11, 2  ;;  %v1623_v61 = vmul.f32 0.5, %v1615_v5  ;;  %v1881_v37 = vld [vmem:[%s3026_s10 + $0x1e] sm:$0x1]  ;;  %v2145_v8 = vld [vmem:[%s3026_s10 + $0x17] sm:$0x1] }
 0x19b   : > { %v1687_v20 = vrot.slane %v3302_v62, 1  ;;  %v1621_v52 = vmul.f32 0.5, %v1613_v29  ;;  %v3318_v9 = vmul.f32 0.5, %v1616_v19  ;;  %v1653_v30 = vrot.slane %v1622_v14, 7  ;;  %v1898_v5 = vld [vmem:[%s3014_s7 + $0x26] sm:$0x1] }
 0x19c   : > { %v3323_v32 = vsel %vm344_vm7, %v870_v3, %v869_v17  ;;  %v3328_v28 = vsel %vm344_vm7, %v1157_v49, %v1156_v22  ;;  %v1940_v35 = vrot.slane %v1895_v31, 7  ;;  %v1887_v39 = vmul.f32 0.5, %v1879_v51  ;;  %v1878_v49 = vld [vmem:[%s3026_s10 + $0x6] sm:$0x1]  ;;  %v2161_v14 = vld [vmem:[%s3014_s7 + $0x17] sm:$0x1] }
 0x19d   : > { %v3334_v42 = vsel %vm344_vm7, %v1135_v54, %v1134_v21  ;;  %v1399_v3 = vsel %vm341_vm6, %v1398_v10, %v1397_v57  ;;  %v1684_v13 = vsel %vm338_vm5, %v1683_v46, %v1682_v36  ;;  %v3342_v53 = vmul.f32 0.5, %v1617_v25  ;;  %v2143_v22 = vld [vmem:[%s3026_s10 + $0x7] sm:$0x1]  ;;  %v1882_v19 = vld [vmem:[%s3026_s10 + $0x26] sm:$0x1] }
 0x19e   : > { %v3344_v47 = vmul.f32 0.5, %v1618_v26  ;;  %v3346_v55 = vmul.f32 0.5, %v1619_v27  ;;  %v1655_v54 = vrot.slane %v1623_v61, 6  ;;  %v1654_v60 = vsel %vm326_vm1, %v1653_v30, %v1621_v52  ;;  %v2146_v31 = vld [vmem:[%s3026_s10 + $0x1f] sm:$0x1] }
 0x19f   : > { %v1941_v4 = vsel %vm326_vm1, %v1940_v35, %v1894_v43  ;;  %v1886_v6 = vmul.f32 0.5, %v1878_v49  ;;  %v1918_v7 = vrot.slane %v1887_v39, 7  ;;  %v2152_v10 = vmul.f32 0.5, %v2144_v48  ;;  %v2162_v36 = vld [vmem:[%s3014_s7 + $0x1f] sm:$0x1] }
 0x1a0   : > { %v3367_v11 = vsel %vm344_vm7, %v1400_v40, %v1399_v3  ;;  %v3369_v12 = vmul.f32 0.5, %v1620_v45  ;;  %v2205_v17 = vrot.slane %v2160_v56, 7  ;;  %v1686_v34 = vsel %vm341_vm6, %v1685_v24, %v1684_v13  ;;  %v1899_v52 = vld [vmem:[%s3014_s7 + $0x2e] sm:$0x1]  ;;  %v1900_v43 = vld [vmem:[%s3014_s7 + $0x36] sm:$0x1] }
 0x1a1   : > { %v1657_v29 = vrot.slane %v3318_v9, 5  ;;  %v1889_v21 = vmul.f32 0.5, %v1881_v37  ;;  %v2153_v51 = vmul.f32 0.5, %v2145_v8  ;;  %v1919_v57 = vsel %vm326_vm1, %v1918_v7, %v1886_v6  ;;  %v1883_v9 = vld [vmem:[%s3026_s10 + $0x2e] sm:$0x1] }
 0x1a2   : > { %v2207_v24 = vrot.slane %v2161_v14, 6  ;;  %v2151_v25 = vmul.f32 0.5, %v2143_v22  ;;  %v2183_v26 = vrot.slane %v2152_v10, 7  ;;  %v3393_v61 = vsel %vm344_vm7, %v1687_v20, %v1686_v34  ;;  %v1884_v49 = vld [vmem:[%s3026_s10 + $0x36] sm:$0x1] }
 0x1a3   : > { %v1659_v27 = vrot.slane %v3342_v53, 4  ;;  %v1890_v30 = vmul.f32 0.5, %v1882_v19  ;;  %v1946_v62 = vrot.slane %v1898_v5, 4  ;;  %v1922_v20 = vrot.slane %v1889_v21, 5  ;;  %v2164_v37 = vld [vmem:[%s3014_s7 + $0x2f] sm:$0x1] }
 0x1a4   : > { %v2154_v35 = vmul.f32 0.5, %v2146_v31  ;;  %v2209_v3 = vrot.slane %v2162_v36, 5  ;;  %v2185_v13 = vrot.slane %v2153_v51, 6  ;;  %v1891_v48 = vmul.f32 0.5, %v1883_v9  ;;  %v1901_v6 = vld [vmem:[%s3014_s7 + $0x3e] sm:$0x1] }
 0x1a5   : > { %v2184_v53 = vsel %vm326_vm1, %v2183_v26, %v2151_v25  ;;  %v1948_v56 = vrot.slane %v1899_v52, 3  ;;  %v1885_v7 = vld [vmem:[%s3026_s10 + $0x3e] sm:$0x1]  ;;  %v1892_v8 = vmul.f32 0.5, %v1884_v49  ;;  %v1950_v14 = vrot.slane %v1900_v43, 2 }
 0x1a6   : > { %v2186_v10 = vsel %vm329_vm2, %v2185_v13, %v2184_v53  ;;  %v2149_v22 = vld [vmem:[%s3026_s10 + $0x37] sm:$0x1]  ;;  %v2213_v19 = vrot.slane %v2164_v37, 3  ;;  %v1952_v31 = vrot.slane %v1901_v6, 1  ;;  %v2166_v25 = vld [vmem:[%s3014_s7 + $0x3f] sm:$0x1] }
 0x1a7   : > { %v1928_v51 = vrot.slane %v1892_v8, 2  ;;  %v2157_v36 = vmul.f32 0.5, %v2149_v22 }
 0x211   : > { %v452_v23 = vpop.xlane.xlu0 %451 }
 0x212   : > { %2798 = vrcp.f32 %v452_v23  ;;  %v1419_v23 = vsel %vm338_vm5, %v1418_v63, %v1417_v44  ;;  %v1897_v63 = vld [vmem:[%s3014_s7 + $0x1e] sm:$0x1]  ;;  %v1888_v44 = vmul.f32 0.5, %v1880_v38 }
 0x213   : > { %v1421_v41 = vsel %vm341_vm6, %v1420_v1, %v1419_v23  ;;  %v1942_v1 = vrot.slane %v1896_v33, 6  ;;  %v2159_v23 = vld [vmem:[%s3014_s7 + $0x7] sm:$0x1]  ;;  %v1944_v46 = vrot.slane %v1897_v63, 5 }
 0x214   : > { %v2206_v45 = vsel %vm326_vm1, %v2205_v17, %v2159_v23  ;;  %v2147_v33 = vld [vmem:[%s3026_s10 + $0x27] sm:$0x1]  ;;  %v1926_v17 = vrot.slane %v1891_v48, 3  ;;  %v1665_v23 = vrot.slane %v3369_v12, 1 }
 0x215   : > { %v1943_v40 = vsel %vm329_vm2, %v1942_v1, %v1941_v4  ;;  %v2155_v63 = vmul.f32 0.5, %v2147_v33  ;;  %v1663_v4 = vrot.slane %v3346_v55, 2 }
 0x216   : > { %v1945_v38 = vsel %vm332_vm3, %v1944_v46, %v1943_v40  ;;  %v1893_v40 = vmul.f32 0.5, %v1885_v7 }
 0x217   : > { %v2189_v21 = vrot.slane %v2155_v63, 4 }
 0x21f   : > { %v2799_v50 = vpop.eup %2798 }
 0x220   : > { %v454_v58 = vmul.f32 %v2799_v50, %v3058_v59  ;;  %v3364_v59 = vsel %vm344_vm7, %v1422_v2, %v1421_v41  ;;  %v1656_v2 = vsel %vm329_vm2, %v1655_v54, %v1654_v60  ;;  %v2163_v41 = vld [vmem:[%s3014_s7 + $0x27] sm:$0x1]  ;;  %v2208_v50 = vsel %vm329_vm2, %v2207_v24, %v2206_v45  ;;  %v2148_v60 = vld [vmem:[%s3026_s10 + $0x2f] sm:$0x1] }
 0x221   : > { %v2156_v34 = vmul.f32 0.5, %v2148_v60 }
 0x222   : > { %455 = vst.msk [vmem:[%s3356_s22] sm:$0xff] %vm443_vm9, %v454_v58  ;;  %2659 = vmatmul.mubr.msk.f32.vlgmr.msra.gmra.mxu1 %vm443_vm9, %v454_v58  ;;  %v1924_v58 = vrot.slane %v1890_v30, 4  ;;  %v1930_v30 = vrot.slane %v1893_v40, 1 }
 0x223   : > { %2662 = vmatpush3.xpose.msk.msra.mxu1 %vm368_vm8, %v3196_v18  ;;  %2663 = vmatprep.mubr.msk.f32.mxu1 %vm2907_vm0, %v2906_v0  ;;  %v1920_v18 = vrot.slane %v1888_v44, 6  ;;  %v2187_v44 = vrot.slane %v2154_v35, 5  ;;  %v2191_v12 = vrot.slane %v2156_v34, 3 }
 0x224   : > { %2671 = vmatprep.subr.mxu1 %v2906_v0 }
 0x225   : > { %v1921_v39 = vsel %vm329_vm2, %v1920_v18, %v1919_v57  ;;  %v2188_v46 = vsel %vm332_vm3, %v2187_v44, %v2186_v10  ;;  %v2150_v57 = vld [vmem:[%s3026_s10 + $0x3f] sm:$0x1] }
 0x226   : > { %2664 = vmatmul.mubr.msk.f32.vlgmr.msra.gmra.mxu1 %vm368_vm8, %v3287_v15  ;;  %v1658_v15 = vsel %vm332_vm3, %v1657_v29, %v1656_v2  ;;  %v1923_v1 = vsel %vm332_vm3, %v1922_v20, %v1921_v39  ;;  %v2165_v29 = vld [vmem:[%s3014_s7 + $0x37] sm:$0x1]  ;;  %v2190_v52 = vsel %vm335_vm4, %v2189_v21, %v2188_v46  ;;  %v2158_v45 = vmul.f32 0.5, %v2150_v57  ;;  %s2910_s7 = smov 12  }
 0x227   : > { %2672 = vmatpush3.xpose.msk.msra.mxu1 %vm368_vm8, %v3293_v16  ;;  %2673 = vmatprep.mubr.msk.f32.mxu1 %vm2907_vm0, %v2906_v0  ;;  %v1661_v16 = vrot.slane %v3344_v47, 3  ;;  %v1660_v54 = vsel %vm335_vm4, %v1659_v27, %v1658_v15  ;;  %v1947_v47 = vsel %vm335_vm4, %v1946_v62, %v1945_v38  ;;  %v1925_v55 = vsel %vm335_vm4, %v1924_v58, %v1923_v1 }
 0x228   : > { %2681 = vmatprep.subr.mxu1 %v2906_v0  ;;  %v1949_v2 = vsel %vm338_vm5, %v1948_v56, %v1947_v47  ;;  %v1927_v24 = vsel %vm338_vm5, %v1926_v17, %v1925_v55  ;;  %v2215_v26 = vrot.slane %v2165_v29, 2  ;;  %v2217_v62 = vrot.slane %v2166_v25, 1 }
 0x229   : > { %v1662_v5 = vsel %vm338_vm5, %v1661_v16, %v1660_v54  ;;  %v2193_v20 = vrot.slane %v2157_v36, 2  ;;  %v2195_v38 = vrot.slane %v2158_v45, 1 }
 0x22a   : > { %2674 = vmatmul.mubr.msk.f32.vlgmr.msra.gmra.mxu1 %vm368_vm8, %v3323_v32  ;;  %v2211_v32 = vrot.slane %v2163_v41, 4  ;;  %v1664_v18 = vsel %vm341_vm6, %v1663_v4, %v1662_v5 }
 0x22b   : > { %2682 = vmatpush3.xpose.msk.msra.mxu1 %vm368_vm8, %v3328_v28  ;;  %2683 = vmatprep.mubr.msk.f32.mxu1 %vm2907_vm0, %v2906_v0  ;;  %v2210_v28 = vsel %vm332_vm3, %v2209_v3, %v2208_v50  ;;  %v1666_v9 = vsel %vm344_vm7, %v1665_v23, %v1664_v18 }
 0x22c   : > { %2691 = vmatprep.subr.mxu1 %v2906_v0 }
 0x22e   : > { %2684 = vmatmul.mubr.msk.f32.vlgmr.msra.gmra.mxu1 %vm368_vm8, %v3334_v42  ;;  %v2212_v42 = vsel %vm335_vm4, %v2211_v32, %v2210_v28 }
 0x22f   : > { %2692 = vmatpush3.xpose.msk.msra.mxu1 %vm368_vm8, %v3364_v59  ;;  %2693 = vmatprep.mubr.msk.f32.mxu1 %vm2907_vm0, %v2906_v0  ;;  %v1951_v59 = vsel %vm341_vm6, %v1950_v14, %v1949_v2  ;;  %v2214_v27 = vsel %vm338_vm5, %v2213_v19, %v2212_v42 }
 0x230   : > { %2701 = vmatprep.subr.mxu1 %v2906_v0  ;;  %v1953_v15 = vsel %vm344_vm7, %v1952_v31, %v1951_v59  ;;  %v2216_v33 = vsel %vm341_vm6, %v2215_v26, %v2214_v27 }
 0x231   : > { %v2218_v39 = vsel %vm344_vm7, %v2217_v62, %v2216_v33  ;;  %v578_v62 = vld [vmem:[%s3066_s13 + $0x9] sm:$0x1] }
 0x232   : > { %2694 = vmatmul.mubr.msk.f32.vlgmr.msra.gmra.mxu1 %vm368_vm8, %v3367_v11  ;;  %v1929_v11 = vsel %vm341_vm6, %v1928_v51, %v1927_v24  ;;  %v724_v33 = vrot.slane %v578_v62, 7 }
 0x233   : > { %2702 = vmatpush3.xpose.msk.msra.mxu1 %vm368_vm8, %v3393_v61  ;;  %2703 = vmatprep.mubr.msk.f32.mxu1 %vm2907_vm0, %v2906_v0  ;;  %v2192_v61 = vsel %vm338_vm5, %v2191_v12, %v2190_v52  ;;  %v1931_v35 = vsel %vm344_vm7, %v1930_v30, %v1929_v11 }
 0x234   : > { %2711 = vmatprep.subr.mxu1 %v2906_v0  ;;  %v2194_v41 = vsel %vm341_vm6, %v2193_v20, %v2192_v61  ;;  %v579_v20 = vld [vmem:[%s3066_s13 + $0x11] sm:$0x1]  ;;  %v577_v61 = vld [vmem:[%s3066_s13 + $0x1] sm:$0x1] }
 0x235   : > { %v2196_v3 = vsel %vm344_vm7, %v2195_v38, %v2194_v41  ;;  %v726_v38 = vrot.slane %v579_v20, 6  ;;  %v581_v41 = vld [vmem:[%s3066_s13 + $0x21] sm:$0x1]  ;;  %v1375_v20 = vld [vmem:[%s3066_s13 + $0x1c] sm:$0x1] }
 0x236   : > { %2704 = vmatmul.mubr.msk.f32.vlgmr.msra.gmra.mxu1 %vm368_vm8, %v1666_v9 }
 0x237   : > { %2712 = vmatpush3.xpose.msk.msra.mxu1 %vm368_vm8, %v1953_v15  ;;  %2713 = vmatprep.mubr.msk.f32.mxu1 %vm2907_vm0, %v2906_v0 }
 0x238   : > { %2721 = vmatprep.subr.mxu1 %v2906_v0 }
 0x23a   : > { %2714 = vmatmul.mubr.msk.f32.vlgmr.msra.gmra.mxu1 %vm368_vm8, %v1931_v35  ;;  %v580_v35 = vld [vmem:[%s3066_s13 + $0x19] sm:$0x1] }
 0x23b   : > { %2722 = vmatpush3.xpose.msk.msra.mxu1 %vm368_vm8, %v2218_v39  ;;  %2723 = vmatprep.mubr.msk.f32.mxu1 %vm2907_vm0, %v2906_v0 }
 0x23e   : > { %2724 = vmatmul.mubr.msk.f32.vlgmr.msra.gmra.mxu1 %vm368_vm8, %v2196_v3  ;;  %v725_v3 = vsel %vm326_vm1, %v724_v33, %v577_v61  ;;  %v1112_v61 = vld [vmem:[%s3066_s13 + $0x2b] sm:$0x1] }
 0x2e2   : > { %v548_v13 = vpop.f32.mrf.mxu1 }
 0x2e3   : > { %552 = vst.msk [vmem:[%s3483_s5] sm:$0xff] %vm368_vm8, %v548_v13  ;;  %v728_v13 = vrot.slane %v580_v35, 5 }
 0x2e4   : > { %v2660_v16 = vpop.f32.mrf.mxu1 }
 0x2e6   : > { %v699_v43 = vpop.f32.mrf.mxu1 }
 0x2e7   : > { %v703_v49 = vsel %vm443_vm9, %v699_v43, -inf }
 0x2e8   : > { %704 = vmax.xlane.f32.xlu1 %v703_v49  ;;  %v2665_v48 = vpop.f32.mrf.mxu1  ;;  %v727_v49 = vsel %vm329_vm2, %v726_v38, %v725_v3 }
 0x2e9   : > { %v730_v48 = vrot.slane %v581_v41, 4  ;;  %v1639_v41 = vld [vmem:[%s3066_s13 + $0x15] sm:$0x1] }
 0x2ea   : > { %v964_v50 = vpop.f32.mrf.mxu1 }
 0x2eb   : > { %v968_v53 = vsel %vm443_vm9, %v964_v50, -inf }
 0x2ec   : > { %969 = vmax.xlane.f32.xlu1 %v968_v53  ;;  %v2675_v54 = vpop.f32.mrf.mxu1  ;;  %v729_v53 = vsel %vm332_vm3, %v728_v13, %v727_v49  ;;  %v849_v49 = vld [vmem:[%s3066_s13 + $0x3a] sm:$0x1] }
 0x2ee   : > { %v1229_v56 = vpop.f32.mrf.mxu1 }
 0x2ef   : > { %v1233_v58 = vsel %vm443_vm9, %v1229_v56, -inf }
 0x2f0   : > { %1234 = vmax.xlane.f32.xlu0 %v1233_v58  ;;  %v2685_v60 = vpop.f32.mrf.mxu1  ;;  %v731_v58 = vsel %vm335_vm4, %v730_v48, %v729_v53  ;;  %v1523_v53 = vrot.slane %v1375_v20, 5  ;;  %v1906_v20 = vld [vmem:[%s3066_s13 + $0x26] sm:$0x1] }
 0x2f2   : > { %v1494_v63 = vpop.f32.mrf.mxu1 }
 0x2f3   : > { %v1498_v47 = vsel %vm443_vm9, %v1494_v63, -inf }
 0x2f4   : > { %1499 = vmax.xlane.f32.xlu1 %v1498_v47  ;;  %v2695_v1 = vpop.f32.mrf.mxu1 }
 0x2f6   : > { %v1759_v37 = vpop.f32.mrf.mxu1 }
 0x2f7   : > { %v1763_v32 = vsel %vm443_vm9, %v1759_v37, -inf }
 0x2f8   : > { %1764 = vmax.xlane.f32.xlu0 %v1763_v32  ;;  %v2705_v44 = vpop.f32.mrf.mxu1 }
 0x2fa   : > { %v2024_v4 = vpop.f32.mrf.mxu1 }
 0x2fb   : > { %v2028_v6 = vsel %vm443_vm9, %v2024_v4, -inf }
 0x2fc   : > { %2029 = vmax.xlane.f32.xlu1 %v2028_v6  ;;  %v2715_v7 = vpop.f32.mrf.mxu1  ;;  %v844_v6 = vld [vmem:[%s3066_s13 + $0x12] sm:$0x1] }
 0x2fe   : > { %v2289_v8 = vpop.f32.mrf.mxu1 }
 0x2ff   : > { %v2293_v28 = vsel %vm443_vm9, %v2289_v8, -inf }
 0x300   : > { %2294 = vmax.xlane.f32.xlu0 %v2293_v28  ;;  %v2725_v10 = vpop.f32.mrf.mxu1  ;;  %v1108_v28 = vld [vmem:[%s3066_s13 + $0xb] sm:$0x1] }
 0x301   : > { %v845_v10 = vld [vmem:[%s3066_s13 + $0x1a] sm:$0x1] }
 0x371   : > { %v705_v5 = vpop.xlane.xlu1 %704 }
 0x372   : > { %v706_v14 = vsub.f32 %v699_v43, %v705_v5  ;;  %v582_v43 = vld [vmem:[%s3066_s13 + $0x29] sm:$0x1]  ;;  %v991_v5 = vrot.slane %v844_v6, 6  ;;  %v1904_v6 = vld [vmem:[%s3066_s13 + $0x16] sm:$0x1] }
 0x373   : > { %v732_v54 = vrot.slane %v582_v43, 3  ;;  %v1903_v43 = vld [vmem:[%s3066_s13 + $0xe] sm:$0x1] }
 0x374   : > { %v707_v17 = vmul.f32 1.442695, %v706_v14 }
 0x375   : > { %v970_v22 = vpop.xlane.xlu1 %969  ;;  %v733_v47 = vsel %vm338_vm5, %v732_v54, %v731_v58  ;;  %v1113_v58 = vld [vmem:[%s3066_s13 + $0x33] sm:$0x1] }
 0x376   : > { %2800 = vpow2.f32 %v707_v17  ;;  %v971_v34 = vsub.f32 %v964_v50, %v970_v22  ;;  %v583_v50 = vld [vmem:[%s3066_s13 + $0x31] sm:$0x1]  ;;  %v1109_v17 = vld [vmem:[%s3066_s13 + $0x13] sm:$0x1]  ;;  %v1254_v22 = vrot.slane %v1108_v28, 7 }
 0x377   : > { %v734_v60 = vrot.slane %v583_v50, 2  ;;  %v1376_v50 = vld [vmem:[%s3066_s13 + $0x24] sm:$0x1] }
 0x378   : > { %v972_v2 = vmul.f32 1.442695, %v971_v34  ;;  %v846_v34 = vld [vmem:[%s3066_s13 + $0x22] sm:$0x1]  ;;  %v1525_v28 = vrot.slane %v1376_v50, 4 }
 0x379   : > { %v1235_v55 = vpop.xlane.xlu0 %1234  ;;  %v735_v32 = vsel %vm341_vm6, %v734_v60, %v733_v47  ;;  %v1262_v60 = vrot.slane %v1112_v61, 3 }
 0x37a   : > { %2802 = vpow2.f32 %v972_v2  ;;  %v1236_v29 = vsub.f32 %v1229_v56, %v1235_v55  ;;  %v584_v56 = vld [vmem:[%s3066_s13 + $0x39] sm:$0x1]  ;;  %v993_v2 = vrot.slane %v845_v10, 5  ;;  %v1107_v55 = vld [vmem:[%s3066_s13 + $0x3] sm:$0x1] }
 0x37b   : > { %v736_v1 = vrot.slane %v584_v56, 1  ;;  %v1902_v10 = vld [vmem:[%s3066_s13 + $0x6] sm:$0x1] }
 0x37c   : > { %v1237_v19 = vmul.f32 1.442695, %v1236_v29 }
 0x37d   : > { %v1500_v21 = vpop.xlane.xlu1 %1499  ;;  %v737_v44 = vsel %vm344_vm7, %v736_v1, %v735_v32  ;;  %v1640_v1 = vld [vmem:[%s3066_s13 + $0x1d] sm:$0x1] }
 0x37e   : > { %2804 = vpow2.f32 %v1237_v19  ;;  %v1501_v23 = vsub.f32 %v1494_v63, %v1500_v21  ;;  %2667 = vmatpush3.msra.mxu0 %v737_v44  ;;  %v1373_v19 = vld [vmem:[%s3066_s13 + $0xc] sm:$0x1]  ;;  %v1110_v21 = vld [vmem:[%s3066_s13 + $0x1b] sm:$0x1] }
 0x37f   : > { %2676 = vmatprep.subr.mxu0 %v2906_v0  ;;  %v1377_v44 = vld [vmem:[%s3066_s13 + $0x2c] sm:$0x1] }
 0x380   : > { %v1502_v40 = vmul.f32 1.442695, %v1501_v23  ;;  %v1256_v23 = vrot.slane %v1109_v17, 6  ;;  %v1114_v17 = vld [vmem:[%s3066_s13 + $0x3b] sm:$0x1] }
 0x381   : > { %v1765_v42 = vpop.xlane.xlu0 %1764 }
 0x382   : > { %2806 = vpow2.f32 %v1502_v40  ;;  %v1766_v46 = vsub.f32 %v1759_v37, %v1765_v42  ;;  %v847_v42 = vld [vmem:[%s3066_s13 + $0x2a] sm:$0x1] }
 0x383   : > { %v3494_v18 = vpop.eup %2800  ;;  %v997_v62 = vrot.slane %v847_v42, 3  ;;  %v1378_v42 = vld [vmem:[%s3066_s13 + $0x34] sm:$0x1] }
 0x384   : > { %v1767_v31 = vmul.f32 1.442695, %v1766_v46  ;;  %v709_v51 = vsel %vm443_vm9, %v3494_v18, 0.0  ;;  %v995_v46 = vrot.slane %v846_v34, 4 }
 0x385   : > { %710 = vadd.xlane.f32.xlu1 %v709_v51  ;;  %v2030_v57 = vpop.xlane.xlu1 %2029 }
 0x386   : > { %2808 = vpow2.f32 %v1767_v31  ;;  %v2031_v36 = vsub.f32 %v2024_v4, %v2030_v57  ;;  %v843_v4 = vld [vmem:[%s3066_s13 + $0xa] sm:$0x1]  ;;  %v1255_v31 = vsel %vm326_vm1, %v1254_v22, %v1107_v55  ;;  %v1111_v57 = vld [vmem:[%s3066_s13 + $0x23] sm:$0x1]  ;;  %v1264_v22 = vrot.slane %v1113_v58, 2 }
 0x387   : > { %v3498_v59 = vpop.eup %2802  ;;  %v989_v7 = vrot.slane %v843_v4, 7  ;;  %v1260_v35 = vrot.slane %v1111_v57, 4  ;;  %v1788_v55 = vrot.slane %v1640_v1, 5  ;;  %v2171_v1 = vld [vmem:[%s3066_s13 + $0x27] sm:$0x1] }
 0x388   : > { %v2032_v24 = vmul.f32 1.442695, %v2031_v36  ;;  %v974_v25 = vsel %vm443_vm9, %v3498_v59, 0.0  ;;  %v1374_v36 = vld [vmem:[%s3066_s13 + $0x14] sm:$0x1] }
 0x389   : > { %975 = vadd.xlane.f32.xlu0 %v974_v25  ;;  %v2295_v26 = vpop.xlane.xlu0 %2294  ;;  %v1258_v25 = vrot.slane %v1110_v21, 5  ;;  %v1521_v33 = vrot.slane %v1374_v36, 6 }
 0x38a   : > { %2810 = vpow2.f32 %v2032_v24  ;;  %v2296_v12 = vsub.f32 %v2289_v8, %v2295_v26  ;;  %v842_v8 = vld [vmem:[%s3066_s13 + $0x2] sm:$0x1]  ;;  %v1519_v24 = vrot.slane %v1373_v19, 7  ;;  %v1372_v26 = vld [vmem:[%s3066_s13 + $0x4] sm:$0x1] }
 0x38b   : > { %v3502_v27 = vpop.eup %2804  ;;  %v990_v14 = vsel %vm326_vm1, %v989_v7, %v842_v8  ;;  %v2049_v7 = vrot.slane %v1903_v43, 7  ;;  %v1001_v8 = vrot.slane %v849_v49, 1 }
 0x38c   : > { %v2297_v52 = vmul.f32 1.442695, %v2296_v12  ;;  %v1239_v9 = vsel %vm443_vm9, %v3502_v27, 0.0  ;;  %v992_v29 = vsel %vm329_vm2, %v991_v5, %v990_v14  ;;  %v1638_v12 = vld [vmem:[%s3066_s13 + $0xd] sm:$0x1]  ;;  %v1520_v38 = vsel %vm326_vm1, %v1519_v24, %v1372_v26 }
 0x38d   : > { %1240 = vadd.xlane.f32.xlu1 %v1239_v9  ;;  %v994_v51 = vsel %vm332_vm3, %v993_v2, %v992_v29  ;;  %v1784_v3 = vrot.slane %v1638_v12, 7  ;;  %v1522_v47 = vsel %vm329_vm2, %v1521_v33, %v1520_v38  ;;  %v2168_v5 = vld [vmem:[%s3066_s13 + $0xf] sm:$0x1]  ;;  %v1641_v2 = vld [vmem:[%s3066_s13 + $0x25] sm:$0x1]  ;;  %v1529_v38 = vrot.slane %v1378_v42, 2 }
 0x38e   : > { %2812 = vpow2.f32 %v2297_v52  ;;  %v1257_v52 = vsel %vm329_vm2, %v1256_v23, %v1255_v31  ;;  %v1524_v34 = vsel %vm332_vm3, %v1523_v53, %v1522_v47  ;;  %v1905_v23 = vld [vmem:[%s3066_s13 + $0x1e] sm:$0x1]  ;;  %v2050_v31 = vsel %vm326_vm1, %v2049_v7, %v1902_v10  ;;  %v1642_v12 = vld [vmem:[%s3066_s13 + $0x2d] sm:$0x1] }
 0x38f   : > { %v3506_v30 = vpop.eup %2806  ;;  %v1259_v13 = vsel %vm332_vm3, %v1258_v25, %v1257_v52  ;;  %v2314_v57 = vrot.slane %v2168_v5, 7  ;;  %v1266_v25 = vrot.slane %v1114_v17, 1  ;;  %v1526_v26 = vsel %vm335_vm4, %v1525_v28, %v1524_v34 }
 0x390   : > { %v1504_v45 = vsel %vm443_vm9, %v3506_v30, 0.0  ;;  %v1261_v32 = vsel %vm335_vm4, %v1260_v35, %v1259_v13  ;;  %v1790_v52 = vrot.slane %v1641_v2, 4  ;;  %v2053_v33 = vrot.slane %v1905_v23, 5  ;;  %v1379_v35 = vld [vmem:[%s3066_s13 + $0x3c] sm:$0x1] }
 0x391   : > { %1505 = vadd.xlane.f32.xlu0 %v1504_v45  ;;  %v848_v45 = vld [vmem:[%s3066_s13 + $0x32] sm:$0x1]  ;;  %v1263_v19 = vsel %vm338_vm5, %v1262_v60, %v1261_v32  ;;  %v1792_v43 = vrot.slane %v1642_v12, 3  ;;  %v1531_v60 = vrot.slane %v1379_v35, 1  ;;  %v2320_v17 = vrot.slane %v2171_v1, 4 }
 0x392   : > { %v999_v48 = vrot.slane %v848_v45, 2 }
 0x393   : > { %v3510_v15 = vpop.eup %2808 }
 0x394   : > { %v1769_v11 = vsel %vm443_vm9, %v3510_v15, 0.0 }
 0x395   : > { %1770 = vadd.xlane.f32.xlu1 %v1769_v11  ;;  %v996_v11 = vsel %vm335_vm4, %v995_v46, %v994_v51  ;;  %v1527_v46 = vrot.slane %v1377_v44, 3  ;;  %v2169_v51 = vld [vmem:[%s3066_s13 + $0x17] sm:$0x1] }
 0x396   : > { %v998_v56 = vsel %vm338_vm5, %v997_v62, %v996_v11  ;;  %v1265_v11 = vsel %vm341_vm6, %v1264_v22, %v1263_v19  ;;  %v2316_v13 = vrot.slane %v2169_v51, 6 }
 0x397   : > { %v3518_v39 = vpop.eup %2810  ;;  %v1000_v14 = vsel %vm341_vm6, %v999_v48, %v998_v56  ;;  %v1267_v50 = vsel %vm344_vm7, %v1266_v25, %v1265_v11  ;;  %v2055_v56 = vrot.slane %v1906_v20, 4  ;;  %v2174_v25 = vld [vmem:[%s3066_s13 + $0x3f] sm:$0x1] }
 0x398   : > { %v2034_v16 = vsel %vm443_vm9, %v3518_v39, 0.0  ;;  %v1002_v24 = vsel %vm344_vm7, %v1001_v8, %v1000_v14  ;;  %v1908_v8 = vld [vmem:[%s3066_s13 + $0x36] sm:$0x1]  ;;  %v2172_v14 = vld [vmem:[%s3066_s13 + $0x2f] sm:$0x1] }
 0x399   : > { %2035 = vadd.xlane.f32.xlu0 %v2034_v16  ;;  %v1637_v16 = vld [vmem:[%s3066_s13 + $0x5] sm:$0x1]  ;;  %v2059_v23 = vrot.slane %v1908_v8, 2  ;;  %v2322_v42 = vrot.slane %v2172_v14, 3 }
 0x39a   : > { %v1785_v4 = vsel %vm326_vm1, %v1784_v3, %v1637_v16  ;;  %v2170_v3 = vld [vmem:[%s3066_s13 + $0x1f] sm:$0x1]  ;;  %v1643_v16 = vld [vmem:[%s3066_s13 + $0x35] sm:$0x1] }
 0x39b   : > { %v3530_v63 = vpop.eup %2812 }
 0x39c   : > { %v2299_v37 = vsel %vm443_vm9, %v3530_v63, 0.0 }
 0x39d   : > { %2300 = vadd.xlane.f32.xlu1 %v2299_v37  ;;  %v1786_v37 = vrot.slane %v1639_v41, 6 }
 0x39f   : > { %v1787_v21 = vsel %vm329_vm2, %v1786_v37, %v1785_v4  ;;  %v2318_v37 = vrot.slane %v2170_v3, 5  ;;  %v1644_v4 = vld [vmem:[%s3066_s13 + $0x3d] sm:$0x1] }
 0x3a0   : > { %v1789_v62 = vsel %vm332_vm3, %v1788_v55, %v1787_v21  ;;  %v1796_v2 = vrot.slane %v1644_v4, 1  ;;  %v1909_v21 = vld [vmem:[%s3066_s13 + $0x3e] sm:$0x1] }
 0x3a1   : > { %v1791_v53 = vsel %vm335_vm4, %v1790_v52, %v1789_v62 }
 0x40e   : > { %v711_v40 = vpop.xlane.xlu1 %710 }
 0x40f   : > { %2814 = vrcp.f32 %v711_v40  ;;  %v2051_v40 = vrot.slane %v1904_v6, 6  ;;  %v1794_v6 = vrot.slane %v1643_v16, 2 }
 0x411   : > { %v2052_v41 = vsel %vm329_vm2, %v2051_v40, %v2050_v31 }
 0x412   : > { %v976_v9 = vpop.xlane.xlu0 %975  ;;  %v2054_v47 = vsel %vm332_vm3, %v2053_v33, %v2052_v41 }
 0x413   : > { %2816 = vrcp.f32 %v976_v9  ;;  %v2167_v9 = vld [vmem:[%s3066_s13 + $0x7] sm:$0x1]  ;;  %v2056_v5 = vsel %vm335_vm4, %v2055_v56, %v2054_v47 }
 0x414   : > { %v2315_v49 = vsel %vm326_vm1, %v2314_v57, %v2167_v9 }
 0x415   : > { %v2317_v7 = vsel %vm329_vm2, %v2316_v13, %v2315_v49 }
 0x416   : > { %v1241_v54 = vpop.xlane.xlu1 %1240  ;;  %v2319_v55 = vsel %vm332_vm3, %v2318_v37, %v2317_v7 }
 0x417   : > { %2818 = vrcp.f32 %v1241_v54  ;;  %v1907_v54 = vld [vmem:[%s3066_s13 + $0x2e] sm:$0x1]  ;;  %v2321_v31 = vsel %vm335_vm4, %v2320_v17, %v2319_v55 }
 0x418   : > { %v2057_v28 = vrot.slane %v1907_v54, 3  ;;  %v2323_v12 = vsel %vm338_vm5, %v2322_v42, %v2321_v31 }
 0x41a   : > { %v1506_v29 = vpop.xlane.xlu0 %1505  ;;  %v2058_v40 = vsel %vm338_vm5, %v2057_v28, %v2056_v5 }
 0x41b   : > { %2820 = vrcp.f32 %v1506_v29 }
 0x41c   : > { %v2815_v36 = vpop.eup %2814 }
 0x41d   : > { %v713_v45 = vmul.f32 %v2815_v36, %v3494_v18  ;;  %v1528_v18 = vsel %vm338_vm5, %v1527_v46, %v1526_v26  ;;  %v2061_v36 = vrot.slane %v1909_v21, 1 }
 0x41e   : > { %v1771_v61 = vpop.xlane.xlu1 %1770  ;;  %v1530_v44 = vsel %vm341_vm6, %v1529_v38, %v1528_v18 }
 0x41f   : > { %2822 = vrcp.f32 %v1771_v61  ;;  %2584 = vst.msk [vmem:[%s3356_s22 + $0x8] sm:$0xff] %vm443_vm9, %v713_v45  ;;  %2669 = vmatmul.mubr.msk.f32.vlgmr.msra.gmra.mxu0 %vm443_vm9, %v713_v45  ;;  %v1532_v34 = vsel %vm344_vm7, %v1531_v60, %v1530_v44  ;;  %v2326_v45 = vrot.slane %v2174_v25, 1 }
 0x420   : > { %v2817_v48 = vpop.eup %2816  ;;  %2677 = vmatpush3.msra.mxu0 %v1002_v24  ;;  %2678 = vmatprep.mubr.msk.f32.mxu0 %vm2907_vm0, %v2906_v0  ;;  %v2060_v24 = vsel %vm341_vm6, %v2059_v23, %v2058_v40 }
 0x421   : > { %2686 = vmatprep.subr.mxu0 %v2906_v0  ;;  %v978_v58 = vmul.f32 %v2817_v48, %v3498_v59  ;;  %v1793_v59 = vsel %vm338_vm5, %v1792_v43, %v1791_v53  ;;  %v2062_v9 = vsel %vm344_vm7, %v2061_v36, %v2060_v24 }
 0x422   : > { %v2036_v32 = vpop.xlane.xlu0 %2035  ;;  %v1795_v19 = vsel %vm341_vm6, %v1794_v6, %v1793_v59 }
 0x423   : > { %2824 = vrcp.f32 %v2036_v32  ;;  %2588 = vst.msk [vmem:[%s3356_s22 + $0x10] sm:$0xff] %vm443_vm9, %v978_v58  ;;  %2679 = vmatmul.mubr.msk.f32.vlgmr.msra.gmra.mxu0 %vm443_vm9, %v978_v58  ;;  %v1797_v57 = vsel %vm344_vm7, %v1796_v2, %v1795_v19 }
 0x424   : > { %v2819_v10 = vpop.eup %2818  ;;  %2687 = vmatpush3.msra.mxu0 %v1267_v50  ;;  %2688 = vmatprep.mubr.msk.f32.mxu0 %vm2907_vm0, %v2906_v0 }
 0x425   : > { %2696 = vmatprep.subr.mxu0 %v2906_v0  ;;  %v1243_v22 = vmul.f32 %v2819_v10, %v3502_v27  ;;  %v2173_v27 = vld [vmem:[%s3066_s13 + $0x37] sm:$0x1]  ;;  %s2911_s13 = smov 16  }
 0x426   : > { %v2301_v29 = vpop.xlane.xlu1 %2300  ;;  %v2324_v26 = vrot.slane %v2173_v27, 2 }
 0x427   : > { %2826 = vrcp.f32 %v2301_v29  ;;  %2592 = vst.msk [vmem:[%s3356_s22 + $0x18] sm:$0xff] %vm443_vm9, %v1243_v22  ;;  %2689 = vmatmul.mubr.msk.f32.vlgmr.msra.gmra.mxu0 %vm443_vm9, %v1243_v22 }
 0x428   : > { %v2821_v46 = vpop.eup %2820  ;;  %2697 = vmatpush3.msra.mxu0 %v1532_v34  ;;  %2698 = vmatprep.mubr.msk.f32.mxu0 %vm2907_vm0, %v2906_v0  ;;  %v2325_v11 = vsel %vm341_vm6, %v2324_v26, %v2323_v12 }
 0x429   : > { %2706 = vmatprep.subr.mxu0 %v2906_v0  ;;  %v1508_v51 = vmul.f32 %v2821_v46, %v3506_v30 }
 0x42b   : > { %2596 = vst.msk [vmem:[%s3356_s22 + $0x20] sm:$0xff] %vm443_vm9, %v1508_v51  ;;  %2699 = vmatmul.mubr.msk.f32.vlgmr.msra.gmra.mxu0 %vm443_vm9, %v1508_v51 }
 0x42c   : > { %v2823_v52 = vpop.eup %2822  ;;  %2707 = vmatpush3.msra.mxu0 %v1797_v57  ;;  %2708 = vmatprep.mubr.msk.f32.mxu0 %vm2907_vm0, %v2906_v0 }
 0x42d   : > { %2716 = vmatprep.subr.mxu0 %v2906_v0  ;;  %v1773_v30 = vmul.f32 %v2823_v52, %v3510_v15  ;;  %v2327_v15 = vsel %vm344_vm7, %v2326_v45, %v2325_v11 }
 0x42f   : > { %2600 = vst.msk [vmem:[%s3356_s22 + $0x28] sm:$0xff] %vm443_vm9, %v1773_v30  ;;  %2709 = vmatmul.mubr.msk.f32.vlgmr.msra.gmra.mxu0 %vm443_vm9, %v1773_v30 }
 0x430   : > { %v2825_v62 = vpop.eup %2824  ;;  %2717 = vmatpush3.msra.mxu0 %v2062_v9  ;;  %2718 = vmatprep.mubr.msk.f32.mxu0 %vm2907_vm0, %v2906_v0 }
 0x431   : > { %2726 = vmatprep.subr.mxu0 %v2906_v0  ;;  %v2038_v20 = vmul.f32 %v2825_v62, %v3518_v39 }
 0x433   : > { %2604 = vst.msk [vmem:[%s3356_s22 + $0x30] sm:$0xff] %vm443_vm9, %v2038_v20  ;;  %2719 = vmatmul.mubr.msk.f32.vlgmr.msra.gmra.mxu0 %vm443_vm9, %v2038_v20 }
 0x434   : > { %v2827_v33 = vpop.eup %2826  ;;  %2727 = vmatpush3.msra.mxu0 %v2327_v15  ;;  %2728 = vmatprep.mubr.msk.f32.mxu0 %vm2907_vm0, %v2906_v0 }
 0x435   : > { %v2303_v61 = vmul.f32 %v2827_v33, %v3530_v63 }
 0x437   : > { %2608 = vst.msk [vmem:[%s3356_s22 + $0x38] sm:$0xff] %vm443_vm9, %v2303_v61  ;;  %2729 = vmatmul.mubr.msk.f32.vlgmr.msra.gmra.mxu0 %vm443_vm9, %v2303_v61  ;;  %s2832_s22 = sshll.u32 %s2912_s18, 4  ;;  %s2833_s22 = int_to_ptr.vmem [resolvable:$false] %s2832_s22 }
 0x438   : > { %s2834_s26 = scalar_lea.vmem %s2833_s22, 2048  ;;  %p2835_p1 = scmp.lt.s32.totalorder %s3681_s9, %s2833_s22 }
 0x439   : > { %p2836_p2 = scmp.lt.s32.totalorder %s2834_s26, %s2828_s24 }
 0x43b   : > { %p2837_p3 = por %p2836_p2, %p2835_p1 }
 0x43d   : > { %p2838_p5 = pnand %p2837_p3, %p2831_p0 }
 0x4df   : > { %v808_v39 = vpop.f32.mrf.mxu0 }
 0x4e0   : > { %813 = vrot.lane.b32.xlu0 %v808_v39, %s2908_s29 }
 0x4e1   : > { %v2670_v35 = vpop.f32.mrf.mxu0 }
 0x4e3   : > { %v1073_v38 = vpop.f32.mrf.mxu0 }
 0x4e4   : > { %1078 = vrot.lane.b32.xlu1 %v1073_v38, %s2909_s6 }
 0x4e5   : > { %v2680_v41 = vpop.f32.mrf.mxu0 }
 0x4e7   : > { %v1338_v0 = vpop.f32.mrf.mxu0 }
 0x4e8   : > { %1343 = vrot.lane.b32.xlu1 %v1338_v0, %s2910_s7 }
 0x4e9   : > { %v2690_v63 = vpop.f32.mrf.mxu0 }
 0x4eb   : > { %v1603_v3 = vpop.f32.mrf.mxu0 }
 0x4ec   : > { %1608 = vrot.lane.b32.xlu1 %v1603_v3, %s2911_s13 }
 0x4ed   : > { %v2700_v13 = vpop.f32.mrf.mxu0 }
 0x4ee   : > { %2841 = shalt.err (!%p2838_p5)
}
 0x4ef   : > { %s2842_s14 = scalar_lea.hbm %s3679_s12, 1024  ;;  %s2846_s7 = scalar_lea.hbm %s3742_s4, 2048 }
 0x4f0   : > { %p2843_p6 = scmp.ne.s32.totalorder %s3679_s12, %s2842_s14  ;;  %p2847_p10 = scmp.lt.s32.totalorder %s3679_s12, %s3742_s4 }
 0x4f1   : > { %p2848_p11 = scmp.lt.s32.totalorder %s2846_s7, %s2842_s14 }
 0x4f2   : > { %p2844_p7 = pnand %p2843_p6, %p2982_p4 }
 0x4f3   : > { %p2849_p12 = por %p2848_p11, %p2847_p10 }
 0x4f4   : > { %p2845_p9 = pneg %p2844_p7 }
 0x4f6   : > { %p2850_p13 = pnand %p2849_p12, %p2845_p9 }
 0x4f8   : > { %2853 = shalt.err (!%p2850_p13)
}
 0x4f9   : > { %s2913_s11 = smov 128   ;;  %v1868_v18 = vpop.f32.mrf.mxu0  ;;  %s2914_s13 = smov 20   ;;  %vm816_vm10 = vcmask 64544   ;;  %vm1081_vm11 = vcmask 97344   ;;  %vm1346_vm12 = vcmask 130144   ;;  %vm1611_vm13 = vcmask 162944  }
 0x4fa   : > { %2731 = dma.vmem_to_hbm [thread:$0]  (%p2982_p4), %s3681_s9, 1024, %s3679_s12, %s3685_s21, %s2913_s11, %s2913_s11, %s2909_s6   ;;  %vm1876_vm14 = vcmask 195744   ;;  %vm2141_vm15 = vcmask 228544   ;;  %vm2406_vm0 = vcmask 261344  }
 0x4fb   : > { %1873 = vrot.lane.b32.xlu0 %v1868_v18, %s2914_s13  ;;  %v2710_v16 = vpop.f32.mrf.mxu0  ;;  %s2915_s24 = smov 24   ;;  %s2916_s18 = smov 28  }
 0x4fd   : > { %v2133_v43 = vpop.f32.mrf.mxu0 }
 0x4fe   : > { %2138 = vrot.lane.b32.xlu1 %v2133_v43, %s2915_s24 }
 0x4ff   : > { %v2720_v49 = vpop.f32.mrf.mxu0 }
 0x501   : > { %v2398_v48 = vpop.f32.mrf.mxu0 }
 0x502   : > { %2403 = vrot.lane.b32.xlu0 %v2398_v48, %s2916_s18 }
 0x503   : > { %v2730_v50 = vpop.f32.mrf.mxu0 }
 0x552   : > { %v814_v53 = vpop.permute.xlu0 %813 }
 0x553   : > { %817 = vst.msk [vmem:[%s3483_s5] sm:$0xff] %vm816_vm10, %v814_v53 }
 0x556   : > { %v1079_v54 = vpop.permute.xlu1 %1078 }
 0x557   : > { %1082 = vst.msk [vmem:[%s3483_s5] sm:$0xff] %vm1081_vm11, %v1079_v54 }
 0x55a   : > { %v1344_v56 = vpop.permute.xlu1 %1343 }
 0x55b   : > { %1347 = vst.msk [vmem:[%s3483_s5] sm:$0xff] %vm1346_vm12, %v1344_v56 }
 0x55e   : > { %v1609_v58 = vpop.permute.xlu1 %1608 }
 0x55f   : > { %1612 = vst.msk [vmem:[%s3483_s5] sm:$0xff] %vm1611_vm13, %v1609_v58 }
 0x56d   : > { %v1874_v60 = vpop.permute.xlu0 %1873 }
 0x56e   : > { %1877 = vst.msk [vmem:[%s3483_s5] sm:$0xff] %vm1876_vm14, %v1874_v60 }
 0x570   : > { %v2139_v47 = vpop.permute.xlu1 %2138 }
 0x571   : > { %2142 = vst.msk [vmem:[%s3483_s5] sm:$0xff] %vm2141_vm15, %v2139_v47 }
 0x574   : > { %v2404_v1 = vpop.permute.xlu0 %2403 }
 0x575   : > { %2407 = vst.msk [vmem:[%s3483_s5] sm:$0xff] %vm2406_vm0, %v2404_v1 }
 0x576 PF: > { %p2737_p4 = scmp.ge.s32.totalorder %s2904_s20, 2  ;;  %s2458_s25 = sand.u32 1, %s2884_s15  }
 0x577   : > { %s2459_s6 = scalar_lea.sflag [#allocation3], %s2458_s25 }
 0x578   : > { %p2734_p0 = pnand %p2737_p4, %p2989_p8 }
 0x57a   : > { %p2735_p1 = pneg %p2734_p0 }
 0x57c   : > { %2879 = dma.done.wait (%p2735_p1), %s2459_s6, 1024  }
 0x57d   : > { %2881 = vsyncadd (%p2735_p1), %s2459_s6, 4294966272  ;;  %s18_s20 = sadd.s32 1, %s2904_s20   ;;  %s3745_s15 = smov %s2888_s16 }
 0x57e   : > { %p15_p2 = scmp.ge.s32.totalorder %s18_s20, 4   ;;  %s3746_s16 = smov %s2892_s17 }
 0x57f   : > { %s3747_s17 = smov %s2995_s28  ;;  %s3748_s18 = smov %s2900_s19 }
 0x580   : > { %s3749_s19 = smov %s3751_s23  ;;  %17 = sbr.rel (!%p15_p2) target bundleno = 4 (0x4), region = 92 }
 0x585   :  { %2464 = vsyncpa [#allocation3], 1 }
 0x586   :  { %2466 = vsyncpa [#allocation3 + $0x1], 1 }

</bundles_post_ra>
